<compile_context>
chip_gen: v5e
topology: v5e:2x2
jax: 0.10.0
libtpu: 0.0.40
codegen_flags: <defaults>
</compile_context>

<pallas_src>
import numpy as np
import jax
import jax.numpy as jnp
from jax import lax
from jax.experimental import pallas as pl
from jax.experimental.pallas import tpu as pltpu

# ---- configuration (mirrors `args` of the PyTorch module) ----
B = 2                 # batch (number of agents)
TOKEN_DIM = 8         # args.token_dim
EMB = 32              # args.emb
HEADS = 2             # args.heads
DEPTH = 2             # args.depth
FF = 4 * EMB          # ff_hidden_mult * emb
ACTIONS = 6           # args.action_space_size
N_ENEMIES = 3         # task_enemy_num
N_ALLIES = 2          # task_ally_num
T_IN = 1 + N_ENEMIES + N_ALLIES   # own token + enemy tokens + ally tokens
T = T_IN + 1                      # + hidden token appended inside the transformer
BT_IN = B * T_IN                  # batch-folded input token rows
BT = B * T                        # batch-folded transformer rows
EPS = 1e-5
NEG_INF = -1e30

QW = ACTIONS + N_ENEMIES          # q output width: [q_basic | per-enemy action means]
QKVW = 3 * HEADS * EMB            # fused q/k/v projection width (192)
OUTW = EMB + QW + 1               # fused output head width: [toprobs | q_head(+pad) | row-mean]
WFF_BIAS = DEPTH * EMB            # row offset of ff1 biases inside the wff slab


def _r8(n):
    return -(-n // 8) * 8


# ---- row layout of the "narrow" static slab (NARROW_W lanes, all blocks 8-row aligned) ----
N_F2W = 0                               # DEPTH*FF rows, lanes 0:EMB   (ff second layer)
N_WU = N_F2W + _r8(DEPTH * FF)          # DEPTH*2*EMB rows, lanes 0:EMB (unify, both heads)
N_WOUT = N_WU + _r8(DEPTH * 2 * EMB)    # EMB+1 rows, lanes 0:OUTW      (fused output head + bias)
N_EMBW = N_WOUT + _r8(EMB + 1)          # TOKEN_DIM rows, lanes 0:EMB   (token embedding)
N_EMBB = N_EMBW + _r8(TOKEN_DIM)        # 1 row
N_VEC = N_EMBB + _r8(1)                 # per depth (stride 8): bu, ln1_w, ln1_b, ff2_b, ln2_w, ln2_b
N_PTOK = N_VEC + DEPTH * 8              # BT rows, lanes 0:BT_IN  (token placement)
N_PHID = N_PTOK + _r8(BT)               # BT rows, lanes 0:B      (hidden-token placement)
N_MASK = N_PHID + _r8(BT)               # BT rows, lanes 0:BT     (additive block-diag mask)
N_EEN = N_MASK + _r8(BT)                # BT rows, lanes 0:QW     (enemy-row -> q-lane indicator)
N_SEL = N_EEN + _r8(BT)                 # 3*B rows, lanes 0:BT    (own / last / batch selectors)
NARROW_ROWS = N_SEL + _r8(3 * B)
NARROW_W = OUTW


def _layernorm(x, w, b):
    mu = jnp.mean(x, axis=-1, keepdims=True)
    var = jnp.mean((x - mu) ** 2, axis=-1, keepdims=True)
    return (x - mu) * lax.rsqrt(var + EPS) * w + b


def transformer_kernel(dyn_ref, wqkv_ref, wff_ref, nar_ref, q_out_ref, h_out_ref):
    f32 = jnp.float32

    # ---- precomputed placement / selection / mask constants (no in-kernel iota) ----
    p_tok = nar_ref[N_PTOK:N_PTOK + BT, 0:BT_IN]          # (BT, BT_IN)
    p_hid = nar_ref[N_PHID:N_PHID + BT, 0:B]              # (BT, B)
    mask_bias = nar_ref[N_MASK:N_MASK + BT, 0:BT]         # (BT, BT) additive 0 / -1e30
    e_en = nar_ref[N_EEN:N_EEN + BT, 0:QW]                # (BT, QW)
    sel_own = nar_ref[N_SEL:N_SEL + B, 0:BT]              # (B, BT)
    sel_last = nar_ref[N_SEL + B:N_SEL + 2 * B, 0:BT]     # (B, BT)
    sel_batch = nar_ref[N_SEL + 2 * B:N_SEL + 3 * B, 0:BT]

    # ---- token embedding + hidden-token placement into batch-folded rows ----
    embed_w = nar_ref[N_EMBW:N_EMBW + TOKEN_DIM, 0:EMB]
    embed_b = nar_ref[N_EMBB:N_EMBB + 1, 0:EMB]
    tok = dyn_ref[0:BT_IN, 0:TOKEN_DIM]                   # (BT_IN, TOKEN_DIM)
    hid = dyn_ref[BT_IN:BT_IN + B, 0:EMB]                 # (B, EMB)
    tok_emb = jnp.dot(tok, embed_w, preferred_element_type=f32) + embed_b
    z = (jnp.dot(p_tok, tok_emb, preferred_element_type=f32)
         + jnp.dot(p_hid, hid, preferred_element_type=f32))                 # (BT, EMB)

    # ---- transformer blocks (static unroll over depth & heads) ----
    for d in range(DEPTH):
        vb = N_VEC + d * 8
        bu = nar_ref[vb + 0:vb + 1, 0:EMB]
        ln1_w = nar_ref[vb + 1:vb + 2, 0:EMB]
        ln1_b = nar_ref[vb + 2:vb + 3, 0:EMB]
        ff2_b = nar_ref[vb + 3:vb + 4, 0:EMB]
        ln2_w = nar_ref[vb + 4:vb + 5, 0:EMB]
        ln2_b = nar_ref[vb + 5:vb + 6, 0:EMB]

        # fused q/k/v projection for BOTH heads (wq pre-scaled by EMB**-0.5 at pack time)
        zqkv = jnp.dot(z, wqkv_ref[d * EMB:(d + 1) * EMB, :],
                       preferred_element_type=f32)                          # (BT, 6*EMB)

        houts = []
        for hh in range(HEADS):
            qh = zqkv[:, hh * EMB:(hh + 1) * EMB]
            kh = zqkv[:, (HEADS + hh) * EMB:(HEADS + hh + 1) * EMB]
            vh = zqkv[:, (2 * HEADS + hh) * EMB:(2 * HEADS + hh + 1) * EMB]

            # q @ k^T without an explicit transpose, + precomputed additive mask
            scores = lax.dot_general(qh, kh, (((1,), (1,)), ((), ())),
                                     preferred_element_type=f32) + mask_bias
            m = jnp.max(scores, axis=-1, keepdims=True)
            e = jnp.exp(scores - m)
            att = e * pl.reciprocal(jnp.sum(e, axis=-1, keepdims=True), approx=True)
            houts.append(jnp.dot(att, vh, preferred_element_type=f32))      # (BT, EMB)

        # fused unify projection over both heads: (BT, 2*EMB) @ (2*EMB, EMB)
        hcat = jnp.concatenate(houts, axis=-1)                              # (BT, 2*EMB)
        wu = nar_ref[N_WU + d * 2 * EMB:N_WU + (d + 1) * 2 * EMB, 0:EMB]
        attended = jnp.dot(hcat, wu, preferred_element_type=f32)            # (BT, EMB)

        y = _layernorm(attended + bu + z, ln1_w, ln1_b)

        ffh = jnp.maximum(
            jnp.dot(y, wff_ref[d * EMB:(d + 1) * EMB, :], preferred_element_type=f32)
            + wff_ref[WFF_BIAS + d:WFF_BIAS + d + 1, :], 0.0)               # (BT, FF)
        f2w = nar_ref[N_F2W + d * FF:N_F2W + (d + 1) * FF, 0:EMB]
        ffo = jnp.dot(ffh, f2w, preferred_element_type=f32) + ff2_b
        z = _layernorm(ffo + y, ln2_w, ln2_b)

    # ---- fused output heads: one matmul -> [toprobs(z) | q_head(z) | per-row action mean] ----
    wout = nar_ref[N_WOUT:N_WOUT + EMB, 0:OUTW]
    outb = nar_ref[N_WOUT + EMB:N_WOUT + EMB + 1, 0:OUTW]
    zo = jnp.dot(z, wout, preferred_element_type=f32) + outb                # (BT, OUTW)

    # hidden-state output: toprobs of the last (hidden) token of each batch element
    h_out_ref[...] = jnp.dot(sel_last, zo[:, 0:EMB], preferred_element_type=f32)

    # q: own-token q_basic in lanes 0:ACTIONS, per-enemy action means in lanes ACTIONS:QW,
    # assembled in registers and stored with one full-width store.
    rowmean = zo[:, OUTW - 1:OUTW]                                          # (BT, 1)
    q_out_ref[...] = (jnp.dot(sel_own, zo[:, EMB:EMB + QW], preferred_element_type=f32)
                      + jnp.dot(sel_batch, rowmean * e_en, preferred_element_type=f32))


def pack_static(params):
    """One-time (init) packing of all weights and constants into 3 static VMEM slabs."""
    p = {k: np.asarray(v, np.float32) for k, v in params.items()}

    # fused q/k/v weights per depth; q pre-scaled by 1/sqrt(EMB) (== dividing q,k by emb**0.25)
    wqkv = np.concatenate([p["wq"] * (float(EMB) ** -0.5), p["wk"], p["wv"]],
                          axis=2).reshape(DEPTH * EMB, QKVW)

    # FF first-layer weights + biases (FF lanes)
    wff = np.zeros((DEPTH * EMB + DEPTH, FF), np.float32)
    wff[:DEPTH * EMB] = p["ff1_w"].reshape(DEPTH * EMB, FF)
    wff[DEPTH * EMB:] = p["ff1_b"].reshape(DEPTH, FF)

    # fused output head: [toprobs_w | toprobs_w @ qbasic_w (+3 zero cols) | its action-mean]
    head_w = p["toprobs_w"] @ p["qbasic_w"]                    # (EMB, ACTIONS)
    head_b = p["toprobs_b"] @ p["qbasic_w"] + p["qbasic_b"]    # (1, ACTIONS)
    wout = np.zeros((EMB + 1, OUTW), np.float32)
    wout[:EMB, 0:EMB] = p["toprobs_w"]
    wout[EMB:, 0:EMB] = p["toprobs_b"]
    wout[:EMB, EMB:EMB + ACTIONS] = head_w
    wout[EMB:, EMB:EMB + ACTIONS] = head_b
    wout[:EMB, OUTW - 1:] = head_w.mean(axis=1, keepdims=True)
    wout[EMB:, OUTW - 1:] = head_b.mean(axis=1, keepdims=True)

    nar = np.zeros((NARROW_ROWS, NARROW_W), np.float32)
    nar[N_F2W:N_F2W + DEPTH * FF, 0:EMB] = p["ff2_w"].reshape(DEPTH * FF, EMB)
    nar[N_WU:N_WU + DEPTH * 2 * EMB, 0:EMB] = p["wu"].reshape(DEPTH * HEADS * EMB, EMB)
    nar[N_WOUT:N_WOUT + EMB + 1, 0:OUTW] = wout
    nar[N_EMBW:N_EMBW + TOKEN_DIM, 0:EMB] = p["embed_w"]
    nar[N_EMBB, 0:EMB] = p["embed_b"][0]
    for d in range(DEPTH):
        vb = N_VEC + d * 8
        for r, name in enumerate(["bu", "ln1_w", "ln1_b", "ff2_b", "ln2_w", "ln2_b"]):
            nar[vb + r, 0:EMB] = p[name][d, 0]

    # constants: placement matrices, block-diagonal additive mask, selection matrices
    nar[N_MASK:N_MASK + BT, 0:BT] = NEG_INF
    for b in range(B):
        for t in range(T_IN):
            nar[N_PTOK + b * T + t, b * T_IN + t] = 1.0          # token placement
        nar[N_PHID + b * T + T - 1, b] = 1.0                     # hidden-token placement
        nar[N_MASK + b * T:N_MASK + (b + 1) * T, b * T:(b + 1) * T] = 0.0
        for i in range(N_ENEMIES):
            nar[N_EEN + b * T + 1 + i, ACTIONS + i] = 1.0        # enemy row -> q lane
        nar[N_SEL + b, b * T] = 1.0                              # own-token selector
        nar[N_SEL + B + b, b * T + T - 1] = 1.0                  # last/hidden-token selector
        nar[N_SEL + 2 * B + b, b * T:(b + 1) * T] = 1.0          # batch-membership selector

    return jnp.asarray(wqkv), jnp.asarray(wff), jnp.asarray(nar)


@jax.jit
def _forward(x, hidden, wqkv, wff, nar):
    # per-call work is only folding the dynamic inputs into one (BT_IN+B, EMB) slab
    tok = x.reshape(BT_IN, TOKEN_DIM).astype(jnp.float32)
    hid = hidden.reshape(B, EMB).astype(jnp.float32)
    dyn = jnp.zeros((BT_IN + B, EMB), jnp.float32)
    dyn = dyn.at[:BT_IN, :TOKEN_DIM].set(tok)
    dyn = dyn.at[BT_IN:, :].set(hid)

    out_shape = [
        jax.ShapeDtypeStruct((B, QW), jnp.float32),
        jax.ShapeDtypeStruct((B, EMB), jnp.float32),
    ]
    q, h = pl.pallas_call(
        transformer_kernel,
        out_shape=out_shape,
        in_specs=[pl.BlockSpec(memory_space=pltpu.MemorySpace.VMEM)] * 4,
        out_specs=[pl.BlockSpec(memory_space=pltpu.MemorySpace.VMEM)] * 2,
    )(dyn, wqkv, wff, nar)
    # (B, ACTIONS + N_ENEMIES), (B, 1, EMB) -- matches (q, h) of the PyTorch module
    return q, h[:, None, :]


def vanilla_transformer_forward(x, hidden, static_pack):
    return _forward(x, hidden, *static_pack)


def init_params(key):
    keys = iter(jax.random.split(key, 32))

    def w(shape, s=0.1):
        return jax.random.normal(next(keys), shape, jnp.float32) * s

    params = {
        "embed_w": w((TOKEN_DIM, EMB)),
        "embed_b": w((1, EMB), 0.01),
        "wq": w((DEPTH, EMB, HEADS * EMB)),
        "wk": w((DEPTH, EMB, HEADS * EMB)),
        "wv": w((DEPTH, EMB, HEADS * EMB)),
        "wu": w((DEPTH, HEADS * EMB, EMB)),
        "bu": w((DEPTH, 1, EMB), 0.01),
        "ln1_w": jnp.ones((DEPTH, 1, EMB), jnp.float32),
        "ln1_b": jnp.zeros((DEPTH, 1, EMB), jnp.float32),
        "ff1_w": w((DEPTH, EMB, FF)),
        "ff1_b": w((DEPTH, 1, FF), 0.01),
        "ff2_w": w((DEPTH, FF, EMB)),
        "ff2_b": w((DEPTH, 1, EMB), 0.01),
        "ln2_w": jnp.ones((DEPTH, 1, EMB), jnp.float32),
        "ln2_b": jnp.zeros((DEPTH, 1, EMB), jnp.float32),
        "toprobs_w": w((EMB, EMB)),
        "toprobs_b": w((1, EMB), 0.01),
        "qbasic_w": w((EMB, ACTIONS)),
        "qbasic_b": w((1, ACTIONS), 0.01),
    }
    return params


def reference_forward(x, hidden, params):
    """Pure-JAX reference mirroring the PyTorch forward semantics."""
    tok = x @ params["embed_w"] + params["embed_b"]
    z = jnp.concatenate([tok, hidden], axis=1)                # (B, T, EMB)
    scale = float(EMB) ** 0.25
    b_, t_, _ = z.shape
    for d in range(DEPTH):
        q = (z @ params["wq"][d]).reshape(b_, t_, HEADS, EMB).transpose(0, 2, 1, 3) / scale
        k = (z @ params["wk"][d]).reshape(b_, t_, HEADS, EMB).transpose(0, 2, 1, 3) / scale
        v = (z @ params["wv"][d]).reshape(b_, t_, HEADS, EMB).transpose(0, 2, 1, 3)
        dot = jax.nn.softmax(jnp.einsum("bhte,bhse->bhts", q, k), axis=-1)
        out = jnp.einsum("bhts,bhse->bhte", dot, v).transpose(0, 2, 1, 3).reshape(b_, t_, HEADS * EMB)
        att = out @ params["wu"][d] + params["bu"][d]
        y = _layernorm(att + z, params["ln1_w"][d], params["ln1_b"][d])
        ff = jax.nn.relu(y @ params["ff1_w"][d] + params["ff1_b"][d])
        ff = ff @ params["ff2_w"][d] + params["ff2_b"][d]
        z = _layernorm(ff + y, params["ln2_w"][d], params["ln2_b"][d])
    outputs = z @ params["toprobs_w"] + params["toprobs_b"]
    q_all = outputs @ params["qbasic_w"] + params["qbasic_b"]
    q_basic = q_all[:, 0, :]
    q_en = jnp.mean(q_all[:, 1:1 + N_ENEMIES, :], axis=2)
    return jnp.concatenate([q_basic, q_en], axis=1), outputs[:, -1:, :]


if __name__ == "__main__":
    key = jax.random.PRNGKey(0)
    kx, kh, kp = jax.random.split(key, 3)
    x = jax.random.normal(kx, (B, T_IN, TOKEN_DIM), jnp.float32)
    # init_hidden() is zeros; use a small non-zero hidden so the hidden-token path is exercised
    hidden = jax.random.normal(kh, (B, 1, EMB), jnp.float32) * 0.1
    params = init_params(kp)

    static_pack = pack_static(params)          # once at init (hoisted out of the per-step path)

    q, h = vanilla_transformer_forward(x, hidden, static_pack)
    jax.block_until_ready((q, h))

    assert q.shape == (B, ACTIONS + N_ENEMIES)
    assert h.shape == (B, 1, EMB)

    q_ref, h_ref = reference_forward(x, hidden, params)
    assert jnp.allclose(q, q_ref, atol=1e-2, rtol=1e-2), "q mismatch vs reference"
    assert jnp.allclose(h, h_ref, atol=1e-2, rtol=1e-2), "h mismatch vs reference"

    print("KERNEL_OK")
</pallas_src>

<mosaic_0001>
module attributes {stable_mosaic.version = 11 : i64} {
  func.func @transformer_kernel(%arg0: memref<14x32xf32, #tpu.memory_space<vmem>>, %arg1: memref<64x192xf32, #tpu.memory_space<vmem>>, %arg2: memref<66x128xf32, #tpu.memory_space<vmem>>, %arg3: memref<528x42xf32, #tpu.memory_space<vmem>>, %arg4: memref<2x9xf32, #tpu.memory_space<vmem>>, %arg5: memref<2x32xf32, #tpu.memory_space<vmem>>) attributes {dimension_semantics = [], scalar_prefetch = 0 : i64, scratch_operands = 0 : i64, tpu.core_type = #tpu.core_type<tc>} {
    %c456 = arith.constant 456 : index
    %c0 = arith.constant 0 : index
    %0 = vector.load %arg3[%c456, %c0] : memref<528x42xf32, #tpu.memory_space<vmem>>, vector<14x12xf32>
    %c472 = arith.constant 472 : index
    %c0_0 = arith.constant 0 : index
    %1 = vector.load %arg3[%c472, %c0_0] : memref<528x42xf32, #tpu.memory_space<vmem>>, vector<14x2xf32>
    %c488 = arith.constant 488 : index
    %c0_1 = arith.constant 0 : index
    %2 = vector.load %arg3[%c488, %c0_1] : memref<528x42xf32, #tpu.memory_space<vmem>>, vector<14x14xf32>
    %c504 = arith.constant 504 : index
    %c0_2 = arith.constant 0 : index
    %3 = vector.load %arg3[%c504, %c0_2] : memref<528x42xf32, #tpu.memory_space<vmem>>, vector<14x9xf32>
    %c520 = arith.constant 520 : index
    %c0_3 = arith.constant 0 : index
    %4 = vector.load %arg3[%c520, %c0_3] : memref<528x42xf32, #tpu.memory_space<vmem>>, vector<2x14xf32>
    %c522 = arith.constant 522 : index
    %c0_4 = arith.constant 0 : index
    %5 = vector.load %arg3[%c522, %c0_4] : memref<528x42xf32, #tpu.memory_space<vmem>>, vector<2x14xf32>
    %c524 = arith.constant 524 : index
    %c0_5 = arith.constant 0 : index
    %6 = vector.load %arg3[%c524, %c0_5] : memref<528x42xf32, #tpu.memory_space<vmem>>, vector<2x14xf32>
    %c424 = arith.constant 424 : index
    %c0_6 = arith.constant 0 : index
    %7 = vector.load %arg3[%c424, %c0_6] : memref<528x42xf32, #tpu.memory_space<vmem>>, vector<8x32xf32>
    %c432 = arith.constant 432 : index
    %c0_7 = arith.constant 0 : index
    %8 = vector.load %arg3[%c432, %c0_7] : memref<528x42xf32, #tpu.memory_space<vmem>>, vector<1x32xf32>
    %c0_8 = arith.constant 0 : index
    %c0_9 = arith.constant 0 : index
    %9 = vector.load %arg0[%c0_8, %c0_9] : memref<14x32xf32, #tpu.memory_space<vmem>>, vector<12x8xf32>
    %c12 = arith.constant 12 : index
    %c0_10 = arith.constant 0 : index
    %10 = vector.load %arg0[%c12, %c0_10] : memref<14x32xf32, #tpu.memory_space<vmem>>, vector<2x32xf32>
    %cst = arith.constant dense<0.000000e+00> : vector<12x32xf32>
    %11 = tpu.matmul %9, %7, %cst {dimension_numbers = #tpu.dot_dimension_numbers<[1], [0], [0], [1], [0, 0, 1, 1], [], []>} : vector<12x8xf32>, vector<8x32xf32>, vector<12x32xf32> -> vector<12x32xf32>
    %12 = vector.broadcast %8 : vector<1x32xf32> to vector<12x32xf32>
    %13 = arith.addf %11, %12 : vector<12x32xf32>
    %cst_11 = arith.constant dense<0.000000e+00> : vector<14x32xf32>
    %14 = tpu.matmul %0, %13, %cst_11 {dimension_numbers = #tpu.dot_dimension_numbers<[1], [0], [0], [1], [0, 0, 1, 1], [], []>} : vector<14x12xf32>, vector<12x32xf32>, vector<14x32xf32> -> vector<14x32xf32>
    %cst_12 = arith.constant dense<0.000000e+00> : vector<14x32xf32>
    %15 = tpu.matmul %1, %10, %cst_12 {dimension_numbers = #tpu.dot_dimension_numbers<[1], [0], [0], [1], [0, 0, 1, 1], [], []>} : vector<14x2xf32>, vector<2x32xf32>, vector<14x32xf32> -> vector<14x32xf32>
    %16 = arith.addf %14, %15 : vector<14x32xf32>
    %c440 = arith.constant 440 : index
    %c0_13 = arith.constant 0 : index
    %17 = vector.load %arg3[%c440, %c0_13] : memref<528x42xf32, #tpu.memory_space<vmem>>, vector<1x32xf32>
    %c441 = arith.constant 441 : index
    %c0_14 = arith.constant 0 : index
    %18 = vector.load %arg3[%c441, %c0_14] : memref<528x42xf32, #tpu.memory_space<vmem>>, vector<1x32xf32>
    %c442 = arith.constant 442 : index
    %c0_15 = arith.constant 0 : index
    %19 = vector.load %arg3[%c442, %c0_15] : memref<528x42xf32, #tpu.memory_space<vmem>>, vector<1x32xf32>
    %c443 = arith.constant 443 : index
    %c0_16 = arith.constant 0 : index
    %20 = vector.load %arg3[%c443, %c0_16] : memref<528x42xf32, #tpu.memory_space<vmem>>, vector<1x32xf32>
    %c444 = arith.constant 444 : index
    %c0_17 = arith.constant 0 : index
    %21 = vector.load %arg3[%c444, %c0_17] : memref<528x42xf32, #tpu.memory_space<vmem>>, vector<1x32xf32>
    %c445 = arith.constant 445 : index
    %c0_18 = arith.constant 0 : index
    %22 = vector.load %arg3[%c445, %c0_18] : memref<528x42xf32, #tpu.memory_space<vmem>>, vector<1x32xf32>
    %c0_19 = arith.constant 0 : index
    %c0_20 = arith.constant 0 : index
    %23 = vector.load %arg1[%c0_19, %c0_20] : memref<64x192xf32, #tpu.memory_space<vmem>>, vector<32x192xf32>
    %cst_21 = arith.constant dense<0.000000e+00> : vector<14x192xf32>
    %24 = tpu.matmul %16, %23, %cst_21 {dimension_numbers = #tpu.dot_dimension_numbers<[1], [0], [0], [1], [0, 0, 1, 1], [], []>} : vector<14x32xf32>, vector<32x192xf32>, vector<14x192xf32> -> vector<14x192xf32>
    %25 = vector.extract_strided_slice %24 {offsets = [0, 0], sizes = [14, 32], strides = [1, 1]} : vector<14x192xf32> to vector<14x32xf32>
    %26 = vector.extract_strided_slice %24 {offsets = [0, 64], sizes = [14, 32], strides = [1, 1]} : vector<14x192xf32> to vector<14x32xf32>
    %27 = vector.extract_strided_slice %24 {offsets = [0, 128], sizes = [14, 32], strides = [1, 1]} : vector<14x192xf32> to vector<14x32xf32>
    %cst_22 = arith.constant dense<0.000000e+00> : vector<14x14xf32>
    %28 = tpu.matmul %25, %26, %cst_22 {dimension_numbers = #tpu.dot_dimension_numbers<[1], [1], [0], [0], [0, 0, 1, 0], [], []>} : vector<14x32xf32>, vector<14x32xf32>, vector<14x14xf32> -> vector<14x14xf32>
    %29 = arith.addf %28, %2 : vector<14x14xf32>
    %cst_23 = arith.constant dense<0xFF800000> : vector<14xf32>
    %30 = vector.multi_reduction <maximumf>, %29, %cst_23 [1] : vector<14x14xf32> to vector<14xf32>
    %31 = vector.shape_cast %30 : vector<14xf32> to vector<14x1xf32>
    %32 = vector.broadcast %31 : vector<14x1xf32> to vector<14x14xf32>
    %33 = arith.subf %29, %32 : vector<14x14xf32>
    %34 = math.exp %33 : vector<14x14xf32>
    %cst_24 = arith.constant dense<0.000000e+00> : vector<14xf32>
    %35 = vector.multi_reduction <add>, %34, %cst_24 [1] : vector<14x14xf32> to vector<14xf32>
    %36 = vector.shape_cast %35 : vector<14xf32> to vector<14x1xf32>
    %37 = tpu.reciprocal %36 {approx = true} : vector<14x1xf32> -> vector<14x1xf32>
    %38 = vector.broadcast %37 : vector<14x1xf32> to vector<14x14xf32>
    %39 = arith.mulf %34, %38 : vector<14x14xf32>
    %cst_25 = arith.constant dense<0.000000e+00> : vector<14x32xf32>
    %40 = tpu.matmul %39, %27, %cst_25 {dimension_numbers = #tpu.dot_dimension_numbers<[1], [0], [0], [1], [0, 0, 1, 1], [], []>} : vector<14x14xf32>, vector<14x32xf32>, vector<14x32xf32> -> vector<14x32xf32>
    %41 = vector.extract_strided_slice %24 {offsets = [0, 32], sizes = [14, 32], strides = [1, 1]} : vector<14x192xf32> to vector<14x32xf32>
    %42 = vector.extract_strided_slice %24 {offsets = [0, 96], sizes = [14, 32], strides = [1, 1]} : vector<14x192xf32> to vector<14x32xf32>
    %43 = vector.extract_strided_slice %24 {offsets = [0, 160], sizes = [14, 32], strides = [1, 1]} : vector<14x192xf32> to vector<14x32xf32>
    %cst_26 = arith.constant dense<0.000000e+00> : vector<14x14xf32>
    %44 = tpu.matmul %41, %42, %cst_26 {dimension_numbers = #tpu.dot_dimension_numbers<[1], [1], [0], [0], [0, 0, 1, 0], [], []>} : vector<14x32xf32>, vector<14x32xf32>, vector<14x14xf32> -> vector<14x14xf32>
    %45 = arith.addf %44, %2 : vector<14x14xf32>
    %cst_27 = arith.constant dense<0xFF800000> : vector<14xf32>
    %46 = vector.multi_reduction <maximumf>, %45, %cst_27 [1] : vector<14x14xf32> to vector<14xf32>
    %47 = vector.shape_cast %46 : vector<14xf32> to vector<14x1xf32>
    %48 = vector.broadcast %47 : vector<14x1xf32> to vector<14x14xf32>
    %49 = arith.subf %45, %48 : vector<14x14xf32>
    %50 = math.exp %49 : vector<14x14xf32>
    %cst_28 = arith.constant dense<0.000000e+00> : vector<14xf32>
    %51 = vector.multi_reduction <add>, %50, %cst_28 [1] : vector<14x14xf32> to vector<14xf32>
    %52 = vector.shape_cast %51 : vector<14xf32> to vector<14x1xf32>
    %53 = tpu.reciprocal %52 {approx = true} : vector<14x1xf32> -> vector<14x1xf32>
    %54 = vector.broadcast %53 : vector<14x1xf32> to vector<14x14xf32>
    %55 = arith.mulf %50, %54 : vector<14x14xf32>
    %cst_29 = arith.constant dense<0.000000e+00> : vector<14x32xf32>
    %56 = tpu.matmul %55, %43, %cst_29 {dimension_numbers = #tpu.dot_dimension_numbers<[1], [0], [0], [1], [0, 0, 1, 1], [], []>} : vector<14x14xf32>, vector<14x32xf32>, vector<14x32xf32> -> vector<14x32xf32>
    %57 = tpu.concatenate %40, %56 in 1 : vector<14x32xf32>, vector<14x32xf32> -> vector<14x64xf32>
    %c256 = arith.constant 256 : index
    %c0_30 = arith.constant 0 : index
    %58 = vector.load %arg3[%c256, %c0_30] : memref<528x42xf32, #tpu.memory_space<vmem>>, vector<64x32xf32>
    %cst_31 = arith.constant dense<0.000000e+00> : vector<14x32xf32>
    %59 = tpu.matmul %57, %58, %cst_31 {dimension_numbers = #tpu.dot_dimension_numbers<[1], [0], [0], [1], [0, 0, 1, 1], [], []>} : vector<14x64xf32>, vector<64x32xf32>, vector<14x32xf32> -> vector<14x32xf32>
    %60 = vector.broadcast %17 : vector<1x32xf32> to vector<14x32xf32>
    %61 = arith.addf %59, %60 : vector<14x32xf32>
    %62 = arith.addf %61, %16 : vector<14x32xf32>
    %cst_32 = arith.constant dense<0.000000e+00> : vector<14xf32>
    %63 = vector.multi_reduction <add>, %62, %cst_32 [1] : vector<14x32xf32> to vector<14xf32>
    %64 = vector.shape_cast %63 : vector<14xf32> to vector<14x1xf32>
    %cst_33 = arith.constant 3.200000e+01 : f32
    %65 = vector.broadcast %cst_33 : f32 to vector<14x1xf32>
    %66 = arith.divf %64, %65 : vector<14x1xf32>
    %67 = vector.broadcast %66 : vector<14x1xf32> to vector<14x32xf32>
    %68 = arith.subf %62, %67 : vector<14x32xf32>
    %69 = arith.mulf %68, %68 : vector<14x32xf32>
    %cst_34 = arith.constant dense<0.000000e+00> : vector<14xf32>
    %70 = vector.multi_reduction <add>, %69, %cst_34 [1] : vector<14x32xf32> to vector<14xf32>
    %71 = vector.shape_cast %70 : vector<14xf32> to vector<14x1xf32>
    %cst_35 = arith.constant 3.200000e+01 : f32
    %72 = vector.broadcast %cst_35 : f32 to vector<14x1xf32>
    %73 = arith.divf %71, %72 : vector<14x1xf32>
    %74 = vector.broadcast %66 : vector<14x1xf32> to vector<14x32xf32>
    %75 = arith.subf %62, %74 : vector<14x32xf32>
    %cst_36 = arith.constant 9.99999974E-6 : f32
    %76 = vector.broadcast %cst_36 : f32 to vector<14x1xf32>
    %77 = arith.addf %73, %76 : vector<14x1xf32>
    %78 = math.rsqrt %77 : vector<14x1xf32>
    %79 = vector.broadcast %78 : vector<14x1xf32> to vector<14x32xf32>
    %80 = arith.mulf %75, %79 : vector<14x32xf32>
    %81 = vector.broadcast %18 : vector<1x32xf32> to vector<14x32xf32>
    %82 = arith.mulf %80, %81 : vector<14x32xf32>
    %83 = vector.broadcast %19 : vector<1x32xf32> to vector<14x32xf32>
    %84 = arith.addf %82, %83 : vector<14x32xf32>
    %c0_37 = arith.constant 0 : index
    %c0_38 = arith.constant 0 : index
    %85 = vector.load %arg2[%c0_37, %c0_38] : memref<66x128xf32, #tpu.memory_space<vmem>>, vector<32x128xf32>
    %cst_39 = arith.constant dense<0.000000e+00> : vector<14x128xf32>
    %86 = tpu.matmul %84, %85, %cst_39 {dimension_numbers = #tpu.dot_dimension_numbers<[1], [0], [0], [1], [0, 0, 1, 1], [], []>} : vector<14x32xf32>, vector<32x128xf32>, vector<14x128xf32> -> vector<14x128xf32>
    %c64 = arith.constant 64 : index
    %c0_40 = arith.constant 0 : index
    %87 = vector.load %arg2[%c64, %c0_40] : memref<66x128xf32, #tpu.memory_space<vmem>>, vector<1x128xf32>
    %88 = vector.broadcast %87 : vector<1x128xf32> to vector<14x128xf32>
    %89 = arith.addf %86, %88 : vector<14x128xf32>
    %cst_41 = arith.constant 0.000000e+00 : f32
    %90 = vector.broadcast %cst_41 : f32 to vector<14x128xf32>
    %91 = arith.maximumf %89, %90 : vector<14x128xf32>
    %c0_42 = arith.constant 0 : index
    %c0_43 = arith.constant 0 : index
    %92 = vector.load %arg3[%c0_42, %c0_43] : memref<528x42xf32, #tpu.memory_space<vmem>>, vector<128x32xf32>
    %cst_44 = arith.constant dense<0.000000e+00> : vector<14x32xf32>
    %93 = tpu.matmul %91, %92, %cst_44 {dimension_numbers = #tpu.dot_dimension_numbers<[1], [0], [0], [1], [0, 0, 1, 1], [], []>} : vector<14x128xf32>, vector<128x32xf32>, vector<14x32xf32> -> vector<14x32xf32>
    %94 = vector.broadcast %20 : vector<1x32xf32> to vector<14x32xf32>
    %95 = arith.addf %93, %94 : vector<14x32xf32>
    %96 = arith.addf %95, %84 : vector<14x32xf32>
    %cst_45 = arith.constant dense<0.000000e+00> : vector<14xf32>
    %97 = vector.multi_reduction <add>, %96, %cst_45 [1] : vector<14x32xf32> to vector<14xf32>
    %98 = vector.shape_cast %97 : vector<14xf32> to vector<14x1xf32>
    %cst_46 = arith.constant 3.200000e+01 : f32
    %99 = vector.broadcast %cst_46 : f32 to vector<14x1xf32>
    %100 = arith.divf %98, %99 : vector<14x1xf32>
    %101 = vector.broadcast %100 : vector<14x1xf32> to vector<14x32xf32>
    %102 = arith.subf %96, %101 : vector<14x32xf32>
    %103 = arith.mulf %102, %102 : vector<14x32xf32>
    %cst_47 = arith.constant dense<0.000000e+00> : vector<14xf32>
    %104 = vector.multi_reduction <add>, %103, %cst_47 [1] : vector<14x32xf32> to vector<14xf32>
    %105 = vector.shape_cast %104 : vector<14xf32> to vector<14x1xf32>
    %cst_48 = arith.constant 3.200000e+01 : f32
    %106 = vector.broadcast %cst_48 : f32 to vector<14x1xf32>
    %107 = arith.divf %105, %106 : vector<14x1xf32>
    %108 = vector.broadcast %100 : vector<14x1xf32> to vector<14x32xf32>
    %109 = arith.subf %96, %108 : vector<14x32xf32>
    %cst_49 = arith.constant 9.99999974E-6 : f32
    %110 = vector.broadcast %cst_49 : f32 to vector<14x1xf32>
    %111 = arith.addf %107, %110 : vector<14x1xf32>
    %112 = math.rsqrt %111 : vector<14x1xf32>
    %113 = vector.broadcast %112 : vector<14x1xf32> to vector<14x32xf32>
    %114 = arith.mulf %109, %113 : vector<14x32xf32>
    %115 = vector.broadcast %21 : vector<1x32xf32> to vector<14x32xf32>
    %116 = arith.mulf %114, %115 : vector<14x32xf32>
    %117 = vector.broadcast %22 : vector<1x32xf32> to vector<14x32xf32>
    %118 = arith.addf %116, %117 : vector<14x32xf32>
    %c448 = arith.constant 448 : index
    %c0_50 = arith.constant 0 : index
    %119 = vector.load %arg3[%c448, %c0_50] : memref<528x42xf32, #tpu.memory_space<vmem>>, vector<1x32xf32>
    %c449 = arith.constant 449 : index
    %c0_51 = arith.constant 0 : index
    %120 = vector.load %arg3[%c449, %c0_51] : memref<528x42xf32, #tpu.memory_space<vmem>>, vector<1x32xf32>
    %c450 = arith.constant 450 : index
    %c0_52 = arith.constant 0 : index
    %121 = vector.load %arg3[%c450, %c0_52] : memref<528x42xf32, #tpu.memory_space<vmem>>, vector<1x32xf32>
    %c451 = arith.constant 451 : index
    %c0_53 = arith.constant 0 : index
    %122 = vector.load %arg3[%c451, %c0_53] : memref<528x42xf32, #tpu.memory_space<vmem>>, vector<1x32xf32>
    %c452 = arith.constant 452 : index
    %c0_54 = arith.constant 0 : index
    %123 = vector.load %arg3[%c452, %c0_54] : memref<528x42xf32, #tpu.memory_space<vmem>>, vector<1x32xf32>
    %c453 = arith.constant 453 : index
    %c0_55 = arith.constant 0 : index
    %124 = vector.load %arg3[%c453, %c0_55] : memref<528x42xf32, #tpu.memory_space<vmem>>, vector<1x32xf32>
    %c32 = arith.constant 32 : index
    %c0_56 = arith.constant 0 : index
    %125 = vector.load %arg1[%c32, %c0_56] : memref<64x192xf32, #tpu.memory_space<vmem>>, vector<32x192xf32>
    %cst_57 = arith.constant dense<0.000000e+00> : vector<14x192xf32>
    %126 = tpu.matmul %118, %125, %cst_57 {dimension_numbers = #tpu.dot_dimension_numbers<[1], [0], [0], [1], [0, 0, 1, 1], [], []>} : vector<14x32xf32>, vector<32x192xf32>, vector<14x192xf32> -> vector<14x192xf32>
    %127 = vector.extract_strided_slice %126 {offsets = [0, 0], sizes = [14, 32], strides = [1, 1]} : vector<14x192xf32> to vector<14x32xf32>
    %128 = vector.extract_strided_slice %126 {offsets = [0, 64], sizes = [14, 32], strides = [1, 1]} : vector<14x192xf32> to vector<14x32xf32>
    %129 = vector.extract_strided_slice %126 {offsets = [0, 128], sizes = [14, 32], strides = [1, 1]} : vector<14x192xf32> to vector<14x32xf32>
    %cst_58 = arith.constant dense<0.000000e+00> : vector<14x14xf32>
    %130 = tpu.matmul %127, %128, %cst_58 {dimension_numbers = #tpu.dot_dimension_numbers<[1], [1], [0], [0], [0, 0, 1, 0], [], []>} : vector<14x32xf32>, vector<14x32xf32>, vector<14x14xf32> -> vector<14x14xf32>
    %131 = arith.addf %130, %2 : vector<14x14xf32>
    %cst_59 = arith.constant dense<0xFF800000> : vector<14xf32>
    %132 = vector.multi_reduction <maximumf>, %131, %cst_59 [1] : vector<14x14xf32> to vector<14xf32>
    %133 = vector.shape_cast %132 : vector<14xf32> to vector<14x1xf32>
    %134 = vector.broadcast %133 : vector<14x1xf32> to vector<14x14xf32>
    %135 = arith.subf %131, %134 : vector<14x14xf32>
    %136 = math.exp %135 : vector<14x14xf32>
    %cst_60 = arith.constant dense<0.000000e+00> : vector<14xf32>
    %137 = vector.multi_reduction <add>, %136, %cst_60 [1] : vector<14x14xf32> to vector<14xf32>
    %138 = vector.shape_cast %137 : vector<14xf32> to vector<14x1xf32>
    %139 = tpu.reciprocal %138 {approx = true} : vector<14x1xf32> -> vector<14x1xf32>
    %140 = vector.broadcast %139 : vector<14x1xf32> to vector<14x14xf32>
    %141 = arith.mulf %136, %140 : vector<14x14xf32>
    %cst_61 = arith.constant dense<0.000000e+00> : vector<14x32xf32>
    %142 = tpu.matmul %141, %129, %cst_61 {dimension_numbers = #tpu.dot_dimension_numbers<[1], [0], [0], [1], [0, 0, 1, 1], [], []>} : vector<14x14xf32>, vector<14x32xf32>, vector<14x32xf32> -> vector<14x32xf32>
    %143 = vector.extract_strided_slice %126 {offsets = [0, 32], sizes = [14, 32], strides = [1, 1]} : vector<14x192xf32> to vector<14x32xf32>
    %144 = vector.extract_strided_slice %126 {offsets = [0, 96], sizes = [14, 32], strides = [1, 1]} : vector<14x192xf32> to vector<14x32xf32>
    %145 = vector.extract_strided_slice %126 {offsets = [0, 160], sizes = [14, 32], strides = [1, 1]} : vector<14x192xf32> to vector<14x32xf32>
    %cst_62 = arith.constant dense<0.000000e+00> : vector<14x14xf32>
    %146 = tpu.matmul %143, %144, %cst_62 {dimension_numbers = #tpu.dot_dimension_numbers<[1], [1], [0], [0], [0, 0, 1, 0], [], []>} : vector<14x32xf32>, vector<14x32xf32>, vector<14x14xf32> -> vector<14x14xf32>
    %147 = arith.addf %146, %2 : vector<14x14xf32>
    %cst_63 = arith.constant dense<0xFF800000> : vector<14xf32>
    %148 = vector.multi_reduction <maximumf>, %147, %cst_63 [1] : vector<14x14xf32> to vector<14xf32>
    %149 = vector.shape_cast %148 : vector<14xf32> to vector<14x1xf32>
    %150 = vector.broadcast %149 : vector<14x1xf32> to vector<14x14xf32>
    %151 = arith.subf %147, %150 : vector<14x14xf32>
    %152 = math.exp %151 : vector<14x14xf32>
    %cst_64 = arith.constant dense<0.000000e+00> : vector<14xf32>
    %153 = vector.multi_reduction <add>, %152, %cst_64 [1] : vector<14x14xf32> to vector<14xf32>
    %154 = vector.shape_cast %153 : vector<14xf32> to vector<14x1xf32>
    %155 = tpu.reciprocal %154 {approx = true} : vector<14x1xf32> -> vector<14x1xf32>
    %156 = vector.broadcast %155 : vector<14x1xf32> to vector<14x14xf32>
    %157 = arith.mulf %152, %156 : vector<14x14xf32>
    %cst_65 = arith.constant dense<0.000000e+00> : vector<14x32xf32>
    %158 = tpu.matmul %157, %145, %cst_65 {dimension_numbers = #tpu.dot_dimension_numbers<[1], [0], [0], [1], [0, 0, 1, 1], [], []>} : vector<14x14xf32>, vector<14x32xf32>, vector<14x32xf32> -> vector<14x32xf32>
    %159 = tpu.concatenate %142, %158 in 1 : vector<14x32xf32>, vector<14x32xf32> -> vector<14x64xf32>
    %c320 = arith.constant 320 : index
    %c0_66 = arith.constant 0 : index
    %160 = vector.load %arg3[%c320, %c0_66] : memref<528x42xf32, #tpu.memory_space<vmem>>, vector<64x32xf32>
    %cst_67 = arith.constant dense<0.000000e+00> : vector<14x32xf32>
    %161 = tpu.matmul %159, %160, %cst_67 {dimension_numbers = #tpu.dot_dimension_numbers<[1], [0], [0], [1], [0, 0, 1, 1], [], []>} : vector<14x64xf32>, vector<64x32xf32>, vector<14x32xf32> -> vector<14x32xf32>
    %162 = vector.broadcast %119 : vector<1x32xf32> to vector<14x32xf32>
    %163 = arith.addf %161, %162 : vector<14x32xf32>
    %164 = arith.addf %163, %118 : vector<14x32xf32>
    %cst_68 = arith.constant dense<0.000000e+00> : vector<14xf32>
    %165 = vector.multi_reduction <add>, %164, %cst_68 [1] : vector<14x32xf32> to vector<14xf32>
    %166 = vector.shape_cast %165 : vector<14xf32> to vector<14x1xf32>
    %cst_69 = arith.constant 3.200000e+01 : f32
    %167 = vector.broadcast %cst_69 : f32 to vector<14x1xf32>
    %168 = arith.divf %166, %167 : vector<14x1xf32>
    %169 = vector.broadcast %168 : vector<14x1xf32> to vector<14x32xf32>
    %170 = arith.subf %164, %169 : vector<14x32xf32>
    %171 = arith.mulf %170, %170 : vector<14x32xf32>
    %cst_70 = arith.constant dense<0.000000e+00> : vector<14xf32>
    %172 = vector.multi_reduction <add>, %171, %cst_70 [1] : vector<14x32xf32> to vector<14xf32>
    %173 = vector.shape_cast %172 : vector<14xf32> to vector<14x1xf32>
    %cst_71 = arith.constant 3.200000e+01 : f32
    %174 = vector.broadcast %cst_71 : f32 to vector<14x1xf32>
    %175 = arith.divf %173, %174 : vector<14x1xf32>
    %176 = vector.broadcast %168 : vector<14x1xf32> to vector<14x32xf32>
    %177 = arith.subf %164, %176 : vector<14x32xf32>
    %cst_72 = arith.constant 9.99999974E-6 : f32
    %178 = vector.broadcast %cst_72 : f32 to vector<14x1xf32>
    %179 = arith.addf %175, %178 : vector<14x1xf32>
    %180 = math.rsqrt %179 : vector<14x1xf32>
    %181 = vector.broadcast %180 : vector<14x1xf32> to vector<14x32xf32>
    %182 = arith.mulf %177, %181 : vector<14x32xf32>
    %183 = vector.broadcast %120 : vector<1x32xf32> to vector<14x32xf32>
    %184 = arith.mulf %182, %183 : vector<14x32xf32>
    %185 = vector.broadcast %121 : vector<1x32xf32> to vector<14x32xf32>
    %186 = arith.addf %184, %185 : vector<14x32xf32>
    %c32_73 = arith.constant 32 : index
    %c0_74 = arith.constant 0 : index
    %187 = vector.load %arg2[%c32_73, %c0_74] : memref<66x128xf32, #tpu.memory_space<vmem>>, vector<32x128xf32>
    %cst_75 = arith.constant dense<0.000000e+00> : vector<14x128xf32>
    %188 = tpu.matmul %186, %187, %cst_75 {dimension_numbers = #tpu.dot_dimension_numbers<[1], [0], [0], [1], [0, 0, 1, 1], [], []>} : vector<14x32xf32>, vector<32x128xf32>, vector<14x128xf32> -> vector<14x128xf32>
    %c65 = arith.constant 65 : index
    %c0_76 = arith.constant 0 : index
    %189 = vector.load %arg2[%c65, %c0_76] : memref<66x128xf32, #tpu.memory_space<vmem>>, vector<1x128xf32>
    %190 = vector.broadcast %189 : vector<1x128xf32> to vector<14x128xf32>
    %191 = arith.addf %188, %190 : vector<14x128xf32>
    %cst_77 = arith.constant 0.000000e+00 : f32
    %192 = vector.broadcast %cst_77 : f32 to vector<14x128xf32>
    %193 = arith.maximumf %191, %192 : vector<14x128xf32>
    %c128 = arith.constant 128 : index
    %c0_78 = arith.constant 0 : index
    %194 = vector.load %arg3[%c128, %c0_78] : memref<528x42xf32, #tpu.memory_space<vmem>>, vector<128x32xf32>
    %cst_79 = arith.constant dense<0.000000e+00> : vector<14x32xf32>
    %195 = tpu.matmul %193, %194, %cst_79 {dimension_numbers = #tpu.dot_dimension_numbers<[1], [0], [0], [1], [0, 0, 1, 1], [], []>} : vector<14x128xf32>, vector<128x32xf32>, vector<14x32xf32> -> vector<14x32xf32>
    %196 = vector.broadcast %122 : vector<1x32xf32> to vector<14x32xf32>
    %197 = arith.addf %195, %196 : vector<14x32xf32>
    %198 = arith.addf %197, %186 : vector<14x32xf32>
    %cst_80 = arith.constant dense<0.000000e+00> : vector<14xf32>
    %199 = vector.multi_reduction <add>, %198, %cst_80 [1] : vector<14x32xf32> to vector<14xf32>
    %200 = vector.shape_cast %199 : vector<14xf32> to vector<14x1xf32>
    %cst_81 = arith.constant 3.200000e+01 : f32
    %201 = vector.broadcast %cst_81 : f32 to vector<14x1xf32>
    %202 = arith.divf %200, %201 : vector<14x1xf32>
    %203 = vector.broadcast %202 : vector<14x1xf32> to vector<14x32xf32>
    %204 = arith.subf %198, %203 : vector<14x32xf32>
    %205 = arith.mulf %204, %204 : vector<14x32xf32>
    %cst_82 = arith.constant dense<0.000000e+00> : vector<14xf32>
    %206 = vector.multi_reduction <add>, %205, %cst_82 [1] : vector<14x32xf32> to vector<14xf32>
    %207 = vector.shape_cast %206 : vector<14xf32> to vector<14x1xf32>
    %cst_83 = arith.constant 3.200000e+01 : f32
    %208 = vector.broadcast %cst_83 : f32 to vector<14x1xf32>
    %209 = arith.divf %207, %208 : vector<14x1xf32>
    %210 = vector.broadcast %202 : vector<14x1xf32> to vector<14x32xf32>
    %211 = arith.subf %198, %210 : vector<14x32xf32>
    %cst_84 = arith.constant 9.99999974E-6 : f32
    %212 = vector.broadcast %cst_84 : f32 to vector<14x1xf32>
    %213 = arith.addf %209, %212 : vector<14x1xf32>
    %214 = math.rsqrt %213 : vector<14x1xf32>
    %215 = vector.broadcast %214 : vector<14x1xf32> to vector<14x32xf32>
    %216 = arith.mulf %211, %215 : vector<14x32xf32>
    %217 = vector.broadcast %123 : vector<1x32xf32> to vector<14x32xf32>
    %218 = arith.mulf %216, %217 : vector<14x32xf32>
    %219 = vector.broadcast %124 : vector<1x32xf32> to vector<14x32xf32>
    %220 = arith.addf %218, %219 : vector<14x32xf32>
    %c384 = arith.constant 384 : index
    %c0_85 = arith.constant 0 : index
    %221 = vector.load %arg3[%c384, %c0_85] : memref<528x42xf32, #tpu.memory_space<vmem>>, vector<32x42xf32>
    %c416 = arith.constant 416 : index
    %c0_86 = arith.constant 0 : index
    %222 = vector.load %arg3[%c416, %c0_86] : memref<528x42xf32, #tpu.memory_space<vmem>>, vector<1x42xf32>
    %cst_87 = arith.constant dense<0.000000e+00> : vector<14x42xf32>
    %223 = tpu.matmul %220, %221, %cst_87 {dimension_numbers = #tpu.dot_dimension_numbers<[1], [0], [0], [1], [0, 0, 1, 1], [], []>} : vector<14x32xf32>, vector<32x42xf32>, vector<14x42xf32> -> vector<14x42xf32>
    %224 = vector.broadcast %222 : vector<1x42xf32> to vector<14x42xf32>
    %225 = arith.addf %223, %224 : vector<14x42xf32>
    %226 = vector.extract_strided_slice %225 {offsets = [0, 0], sizes = [14, 32], strides = [1, 1]} : vector<14x42xf32> to vector<14x32xf32>
    %cst_88 = arith.constant dense<0.000000e+00> : vector<2x32xf32>
    %227 = tpu.matmul %5, %226, %cst_88 {dimension_numbers = #tpu.dot_dimension_numbers<[1], [0], [0], [1], [0, 0, 1, 1], [], []>} : vector<2x14xf32>, vector<14x32xf32>, vector<2x32xf32> -> vector<2x32xf32>
    %c0_89 = arith.constant 0 : index
    %c0_90 = arith.constant 0 : index
    %228 = vector.load %arg5[%c0_89, %c0_90] : memref<2x32xf32, #tpu.memory_space<vmem>>, vector<2x32xf32>
    tpu.vector_store %arg5[%c0_89, %c0_90], %227 {strides = array<i32>} : memref<2x32xf32, #tpu.memory_space<vmem>>, vector<2x32xf32>,
    %229 = vector.extract_strided_slice %225 {offsets = [0, 41], sizes = [14, 1], strides = [1, 1]} : vector<14x42xf32> to vector<14x1xf32>
    %230 = vector.extract_strided_slice %225 {offsets = [0, 32], sizes = [14, 9], strides = [1, 1]} : vector<14x42xf32> to vector<14x9xf32>
    %cst_91 = arith.constant dense<0.000000e+00> : vector<2x9xf32>
    %231 = tpu.matmul %4, %230, %cst_91 {dimension_numbers = #tpu.dot_dimension_numbers<[1], [0], [0], [1], [0, 0, 1, 1], [], []>} : vector<2x14xf32>, vector<14x9xf32>, vector<2x9xf32> -> vector<2x9xf32>
    %232 = vector.broadcast %229 : vector<14x1xf32> to vector<14x9xf32>
    %233 = arith.mulf %232, %3 : vector<14x9xf32>
    %cst_92 = arith.constant dense<0.000000e+00> : vector<2x9xf32>
    %234 = tpu.matmul %6, %233, %cst_92 {dimension_numbers = #tpu.dot_dimension_numbers<[1], [0], [0], [1], [0, 0, 1, 1], [], []>} : vector<2x14xf32>, vector<14x9xf32>, vector<2x9xf32> -> vector<2x9xf32>
    %235 = arith.addf %231, %234 : vector<2x9xf32>
    %c0_93 = arith.constant 0 : index
    %c0_94 = arith.constant 0 : index
    %236 = vector.load %arg4[%c0_93, %c0_94] : memref<2x9xf32, #tpu.memory_space<vmem>>, vector<2x9xf32>
    tpu.vector_store %arg4[%c0_93, %c0_94], %235 {strides = array<i32>} : memref<2x9xf32, #tpu.memory_space<vmem>>, vector<2x9xf32>,
    return
  }
}

</mosaic_0001>

<bundles_post_ra>
// kernel: _forward.1
= control target key start
LH: loop header
LB: loop body
LE: loop exit
PB: predicated region body
PF: predicated region fallthrough
CT: control target
= control target key end

     0   :  { %11 = vsyncpa [#allocation3], 0  ;;  %vm38_vm0 = vcmask 64512   ;;  %s2011_s0 = inlined_call_operand.vmem [shape: f32[14,32], index: 0, kind: input, shape index: {}]   ;;  %s2012_s1 = inlined_call_operand.vmem [shape: f32[64,192], index: 1, kind: input, shape index: {}]   ;;  %s2013_s2 = inlined_call_operand.vmem [shape: f32[66,128], index: 2, kind: input, shape index: {}]   ;;  %s2014_s3 = inlined_call_operand.vmem [shape: f32[528,42], index: 3, kind: input, shape index: {}]   ;;  %s2015_s4 = inlined_call_operand.hbm [shape: f32[2,9], index: 4, kind: output, shape index: {0}]   ;;  %s2016_s5 = inlined_call_operand.hbm [shape: f32[2,32], index: 5, kind: output, shape index: {1}]  }
   0x1   :  { %v32_v0 = vld [vmem:[%s2014_s3 + $0x1a8] sm:$0xff]  ;;  %v34_v1 = vld [vmem:[%s2011_s0] sm:$0xff] }
   0x2   :  { %60 = vmatpush.msra.mxu0 %v32_v0 }
   0x3   :  { %1281 = vmatmul.msk.f32.vlgmr.msra.gmra.mxu0 %vm38_vm0, %v34_v1 }
   0x4   :  { %12 = vsyncpa [#allocation5], 0  ;;  %v35_v2 = vld [vmem:[%s2011_s0 + $0x8] sm:$0xf]  ;;  %v36_v3 = vld [vmem:[%s2011_s0 + $0xc] sm:$0x3] }
   0x5   :  { %vm75_vm1 = vcmask 1041408   ;;  %v24_v4 = vld [vmem:[%s2014_s3 + $0x1e0] sm:$0x3f]  ;;  %vm68_vm2 = vcmask 15360   ;;  %v23_v5 = vld [vmem:[%s2014_s3 + $0x1d8] sm:$0xff]  ;;  %vm109_vm3 = vcmask 1043456  }
   0x6   :  { %1341 = vmatpush.msk.msra.mxu2 %vm75_vm1, %v36_v3  ;;  %1283 = vmatpush.msk.msra.mxu1 %vm75_vm1, %v36_v3  ;;  %v1351_v7 = vld [vmem:[%s2014_s3 + $0x1b0] ss:$0 sm:$0xff]  ;;  %v21_v11 = vld [vmem:[%s2014_s3 + $0x1c8] sm:$0xff]  ;;  %vm102_vm4 = vcmask 97280   ;;  %v149_v14 = vld [vmem:[%s2012_s1 + $0x38] sm:$0xff]  ;;  %vm150_vm5 = vcmask 261120  }
   0x7   :  { %1285 = vmatmul.msk.f32.vlgmr.msra.gmra.mxu2 %vm68_vm2, %v24_v4  ;;  %1284 = vmatmul.msk.f32.vlgmr.msra.gmra.mxu1 %vm68_vm2, %v23_v5  ;;  %v22_v12 = vld [vmem:[%s2014_s3 + $0x1d0] sm:$0x3f]  ;;  %v146_v15 = vld [vmem:[%s2012_s1 + $0x20] sm:$0xff]  ;;  %v147_v16 = vld [vmem:[%s2012_s1 + $0x28] sm:$0xff]  ;;  %vm270_vm6 = vcmask 1045504   ;;  %s1469_s26 = smov 96  }
   0x8   :  { %v148_v13 = vld [vmem:[%s2012_s1 + $0x30] sm:$0xff]  ;;  %192 = vmatpush.msrb.mxu0 %v149_v14  ;;  %v145_v18 = vld [vmem:[%s2012_s1 + $0x18] sm:$0xff]  ;;  %v142_v19 = vld [vmem:[%s2012_s1] sm:$0xff]  ;;  %s1470_s27 = smov 64   ;;  %s1471_s28 = smov 32   ;;  %vm240_vm7 = vcmask 113664  }
   0x9   :  { %169 = vmatpush.msra.mxu3 %v148_v13  ;;  %v144_v17 = vld [vmem:[%s2012_s1 + $0x10] sm:$0xff]  ;;  %v143_v20 = vld [vmem:[%s2012_s1 + $0x8] sm:$0xff]  ;;  %vm244_vm8 = vcmask 111616   ;;  %vm414_vm9 = vcmask 523264   ;;  %vm449_vm10 = vcmask 259072   ;;  %s1474_s9 = smov [#allocation4]  }
   0xa   :  { %193 = vmatpush.msrb.mxu0 %v147_v16  ;;  %v1590_v37 = vld [vmem:[%s2014_s3 + $0x1e8] sm:$0xff]  ;;  %v1597_v41 = vld [vmem:[%s2014_s3 + $0x1f0] sm:$0x3f]  ;;  %s1265_s10 = sshll.u32 %s1474_s9, 4  ;;  %s1475_s13 = smov [#allocation2]   ;;  %s1266_s10 = int_to_ptr.vmem [resolvable:$true] %s1265_s10 }
   0xb   :  { %1282 = vmatmul.msk.f32.gmra.mxu0 %vm38_vm0, %v35_v2  ;;  %170 = vmatpush.msra.mxu3 %v146_v15  ;;  %s1254_s14 = sshll.u32 %s1475_s13, 4  ;;  %s1256_s16 = sshll.u32 %s2015_s4, 4  ;;  %s1255_s14 = int_to_ptr.vmem [resolvable:$true] %s1254_s14  ;;  %s1257_s16 = int_to_ptr.hbm [resolvable:$true] %s1256_s16 }
   0xc   :  { %194 = vmatpush.msrb.mxu0 %v145_v18 }
   0xd   :  { %171 = vmatpush.msra.mxu3 %v144_v17 }
   0xe   :  { %195 = vmatpush.msrb.mxu0 %v143_v20 }
   0xf   :  { %172 = vmatpush.msra.mxu3 %v142_v19 }
  0x80   :  { %v62_v6 = vpop.f32.mrf.mxu0 }
  0x81   :  { %v63_v10 = vadd.f32 %v1351_v7, %v62_v6 }
  0x84   :  { %v96_v22 = vpop.f32.mrf.mxu1 }
  0x88   :  { %v65_v8 = vpop.f32.mrf.mxu0 }
  0x89   :  { %v66_v9 = vadd.f32 %v1351_v7, %v65_v8 }
  0x8a   :  { %v99_v21 = vpop.f32.mrf.mxu2 }
  0x8b   :  { %1286 = vmatpush.msk.msrb.mxu2 %vm109_vm3, %v66_v9 }
  0x8d   :  { %128 = vmatpush.msrb.mxu2 %v63_v10 }
  0x8e   :  { %1287 = vmatmul.msk.f32.vlgmr.msrb.gmra.mxu2 %vm102_vm4, %v21_v11 }
  0x96   :  { %1288 = vmatmul.msk.f32.gmra.mxu2 %vm102_vm4, %v22_v12 }
 0x111   :  { %v130_v23 = vpop.f32.mrf.mxu2 }
 0x112   :  { %v1557_v24 = vadd.f32 %v130_v23, %v96_v22  ;;  %v411_v22 = vld [vmem:[%s2014_s3 + $0x130] sm:$0xff]  ;;  %v410_v23 = vld [vmem:[%s2014_s3 + $0x128] sm:$0xff] }
 0x114   :  { %1289 = vmatmul.msk.f32.vlgmr.msra.gmra.mxu3 %vm150_vm5, %v1557_v24  ;;  %1291 = vmatmul.msk.f32.vlgmr.msrb.gmra.mxu0 %vm150_vm5, %v1557_v24 }
 0x119   :  { %v133_v25 = vpop.f32.mrf.mxu2 }
 0x11a   :  { %v1563_v26 = vadd.f32 %v133_v25, %v99_v21  ;;  %v412_v21 = vld [vmem:[%s2014_s3 + $0x138] sm:$0xff]  ;;  %v409_v25 = vld [vmem:[%s2014_s3 + $0x120] sm:$0xff] }
 0x11c   :  { %1290 = vmatmul.msk.f32.gmra.mxu3 %vm150_vm5, %v1563_v26  ;;  %1292 = vmatmul.msk.f32.gmra.mxu0 %vm150_vm5, %v1563_v26 }
 0x191   :  { %v1569_v27 = vpop.f32.mrf.mxu0 }
 0x197   :  { %v174_v28 = vpop.f32.mrf.mxu3 }
 0x198   :  { %297 = vrot.lane.b32.xlu1 %v174_v28, %s1469_s26 }
 0x199   :  { %v200_v29 = vpop.f32.mrf.mxu0 }
 0x19a   :  { %1297 = vmatpush.msk.msra.mxu2 %vm270_vm6, %v200_v29 }
 0x19c   :  { %289 = vmatpush.msra.mxu2 %v1569_v27 }
 0x19f   :  { %v177_v30 = vpop.f32.mrf.mxu3 }
 0x1a0   :  { %207 = vrot.lane.b32.xlu2 %v177_v30, %s1470_s27  ;;  %299 = vrot.lane.b32.xlu1 %v177_v30, %s1469_s26 }
 0x1a1   :  { %303 = vrot.lane.b32.xlu0 %v177_v30, %s1471_s28 }
 0x1a8   :  { %205 = vrot.lane.b32.xlu2 %v174_v28, %s1470_s27 }
 0x1a9   :  { %301 = vrot.lane.b32.xlu0 %v174_v28, %s1471_s28 }
 0x1fa   :  { %v208_v31 = vpop.permute.xlu2 %207 }
 0x1fb   :  { %1293 = vmatpush.xpose.msk.msrb.mxu1 %vm150_vm5, %v208_v31 }
 0x202   :  { %v206_v32 = vpop.permute.xlu2 %205 }
 0x203   :  { %1294 = vmatpush.xpose.msk.msrb.mxu1 %vm150_vm5, %v206_v32  ;;  %v405_v32 = vld [vmem:[%s2014_s3 + $0x100] sm:$0xff] }
 0x206   :  { %1295 = vmatmul.msk.f32.vlgmr.msrb.gmra.mxu1 %vm150_vm5, %v174_v28  ;;  %v407_v28 = vld [vmem:[%s2014_s3 + $0x110] sm:$0xff] }
 0x207   :  { %429 = vmatpush.msra.mxu1 %v412_v21 }
 0x209   :  { %430 = vmatpush.msra.mxu1 %v411_v22  ;;  %v549_v22 = vld [vmem:[%s2014_s3 + $0x40] sm:$0xff] }
 0x20a   :  { %v298_v35 = vpop.permute.xlu1 %297 }
 0x20b   :  { %431 = vmatpush.msra.mxu1 %v410_v23 }
 0x20d   :  { %432 = vmatpush.msra.mxu1 %v409_v25 }
 0x20e   :  { %1296 = vmatmul.msk.f32.gmra.mxu1 %vm150_vm5, %v177_v30 }
 0x212   :  { %v300_v36 = vpop.permute.xlu1 %299 }
 0x213   :  { %v304_v33 = vpop.permute.xlu0 %303 }
 0x214   :  { %1300 = vmatpush.xpose.msk.msrb.mxu3 %vm150_vm5, %v304_v33 }
 0x21b   :  { %v302_v34 = vpop.permute.xlu0 %301 }
 0x21c   :  { %1301 = vmatpush.xpose.msk.msrb.mxu3 %vm150_vm5, %v302_v34 }
 0x21f   :  { %1302 = vmatmul.msk.f32.vlgmr.msrb.gmra.mxu3 %vm150_vm5, %v298_v35 }
 0x227   :  { %1303 = vmatmul.msk.f32.gmra.mxu3 %vm150_vm5, %v300_v36 }
 0x283   :  { %v234_v38 = vpop.f32.mrf.mxu1 }
 0x284   :  { %v235_v39 = vadd.f32 %v234_v38, %v1590_v37 }
 0x286   :  { %v241_v40 = vsel %vm240_vm7, %v235_v39, -inf }
 0x287   :  { %242 = vmax.xlane.f32.xlu2 %v241_v40  ;;  %v1352_v40 = vld [vmem:[%s2014_s3 + $0x1b8] ss:$0 sm:$0xff] }
 0x28b   :  { %v237_v42 = vpop.f32.mrf.mxu1 }
 0x28c   :  { %v238_v43 = vadd.f32 %v237_v42, %v1597_v41 }
 0x28e   :  { %v245_v44 = vsel %vm244_vm8, %v238_v43, -inf }
 0x28f   :  { %246 = vmax.xlane.f32.xlu2 %v245_v44 }
 0x2a2   :  { %v330_v45 = vpop.f32.mrf.mxu3 }
 0x2a3   :  { %v331_v46 = vadd.f32 %v330_v45, %v1590_v37 }
 0x2a5   :  { %v336_v47 = vsel %vm240_vm7, %v331_v46, -inf }
 0x2a6   :  { %337 = vmax.xlane.f32.xlu0 %v336_v47 }
 0x2aa   :  { %v333_v48 = vpop.f32.mrf.mxu3 }
 0x2ab   :  { %v334_v49 = vadd.f32 %v333_v48, %v1597_v41 }
 0x2ad   :  { %v339_v50 = vsel %vm244_vm8, %v334_v49, -inf }
 0x2ae   :  { %340 = vmax.xlane.f32.xlu1 %v339_v50  ;;  %v1472_v50 = vmov 32.0  }
 0x2c7   :  { %361 = vrot.lane.b32.xlu1 %v200_v29, %s1469_s26  ;;  %v406_v29 = vld [vmem:[%s2014_s3 + $0x108] sm:$0xff] }
 0x2fa   :  { %v243_v54 = vpop.xlane.xlu2 %242 }
 0x2fb   :  { %v248_v58 = vsub.f32 %v235_v39, %v243_v54 }
 0x2fd   :  { %v250_v61 = vmul.f32 1.442695, %v248_v58 }
 0x302   :  { %v247_v62 = vpop.xlane.xlu2 %246 }
 0x303   :  { %v249_v0 = vsub.f32 %v238_v43, %v247_v62 }
 0x305   :  { %v252_v2 = vmul.f32 1.442695, %v249_v0 }
 0x319   :  { %v338_v51 = vpop.xlane.xlu0 %337 }
 0x31a   :  { %v342_v52 = vsub.f32 %v331_v46, %v338_v51 }
 0x31c   :  { %v344_v53 = vmul.f32 1.442695, %v342_v52 }
 0x31e   :  { %1367 = vpow2.f32 %v344_v53 }
 0x321   :  { %v341_v55 = vpop.xlane.xlu1 %340 }
 0x322   :  { %v343_v56 = vsub.f32 %v334_v49, %v341_v55 }
 0x324   :  { %v1368_v57 = vpop.eup %1367  ;;  %v346_v59 = vmul.f32 1.442695, %v343_v56 }
 0x325   :  { %v348_v60 = vsel %vm240_vm7, %v1368_v57, 0.0 }
 0x326   :  { %1369 = vpow2.f32 %v346_v59  ;;  %349 = vadd.xlane.f32.xlu0 %v348_v60 }
 0x327   :  { %1371 = vpow2.f32 %v250_v61 }
 0x328   :  { %1373 = vpow2.f32 %v252_v2  ;;  %v506_v2 = vld [vmem:[%s2013_s2 + $0x10] sm:$0xff] }
 0x32c   :  { %v1370_v63 = vpop.eup %1369 }
 0x32d   :  { %v351_v1 = vsel %vm244_vm8, %v1370_v63, 0.0  ;;  %v1372_v3 = vpop.eup %1371 }
 0x32e   :  { %352 = vadd.xlane.f32.xlu2 %v351_v1  ;;  %v254_v4 = vsel %vm240_vm7, %v1372_v3, 0.0  ;;  %v1374_v6 = vpop.eup %1373  ;;  %v507_v1 = vld [vmem:[%s2013_s2 + $0x18] sm:$0xff] }
 0x32f   :  { %v257_v7 = vsel %vm244_vm8, %v1374_v6, 0.0  ;;  %528 = vmatpush.msrb.mxu2 %v507_v1 }
 0x331   :  { %529 = vmatpush.msrb.mxu2 %v506_v2 }
 0x336   :  { %255 = vadd.xlane.f32.xlu2 %v254_v4  ;;  %v504_v4 = vld [vmem:[%s2013_s2] sm:$0xff] }
 0x339   :  { %v362_v5 = vpop.permute.xlu1 %361 }
 0x33a   :  { %1304 = vmatpush.msk.msra.mxu0 %vm270_vm6, %v362_v5  ;;  %359 = vrot.lane.b32.xlu0 %v1569_v27, %s1469_s26  ;;  %v408_v27 = vld [vmem:[%s2014_s3 + $0x118] sm:$0xff] }
 0x33b   :  { %433 = vmatpush.msra.mxu1 %v408_v27  ;;  %v548_v27 = vld [vmem:[%s2014_s3 + $0x38] sm:$0xff] }
 0x33d   :  { %434 = vmatpush.msra.mxu1 %v407_v28 }
 0x33e   :  { %258 = vadd.xlane.f32.xlu2 %v257_v7 }
 0x33f   :  { %435 = vmatpush.msra.mxu1 %v406_v29 }
 0x341   :  { %436 = vmatpush.msra.mxu1 %v405_v32 }
 0x399   :  { %v350_v8 = vpop.xlane.xlu0 %349 }
 0x39a   :  { %1375 = vrcp.f32 %v350_v8  ;;  %v556_v8 = vld [vmem:[%s2014_s3 + $0x78] sm:$0xff] }
 0x39b   :  { %558 = vmatpush.msra.mxu3 %v556_v8 }
 0x3a0   :  { %v1376_v10 = vpop.eup %1375 }
 0x3a1   :  { %v353_v9 = vpop.xlane.xlu2 %352  ;;  %v356_v12 = vmul.f32 %v1376_v10, %v1368_v57  ;;  %v554_v10 = vld [vmem:[%s2014_s3 + $0x68] sm:$0xff] }
 0x3a9   :  { %v256_v11 = vpop.xlane.xlu2 %255 }
 0x3aa   :  { %1377 = vrcp.f32 %v256_v11 }
 0x3ab   :  { %1379 = vrcp.f32 %v353_v9  ;;  %v555_v9 = vld [vmem:[%s2014_s3 + $0x70] sm:$0xff] }
 0x3ac   :  { %v360_v13 = vpop.permute.xlu0 %359  ;;  %559 = vmatpush.msra.mxu3 %v555_v9 }
 0x3ad   :  { %387 = vmatpush.msra.mxu0 %v360_v13  ;;  %v553_v13 = vld [vmem:[%s2014_s3 + $0x60] sm:$0xff] }
 0x3ae   :  { %1305 = vmatmul.msk.f32.vlgmr.msra.gmra.mxu0 %vm240_vm7, %v356_v12  ;;  %560 = vmatpush.msra.mxu3 %v554_v10 }
 0x3b0   :  { %v1378_v14 = vpop.eup %1377  ;;  %561 = vmatpush.msra.mxu3 %v553_v13 }
 0x3b1   :  { %v1380_v15 = vpop.eup %1379  ;;  %v262_v16 = vmul.f32 %v1378_v14, %v1372_v3  ;;  %v259_v17 = vpop.xlane.xlu2 %258  ;;  %v505_v3 = vld [vmem:[%s2013_s2 + $0x8] sm:$0xff] }
 0x3b2   :  { %1381 = vrcp.f32 %v259_v17  ;;  %v357_v18 = vmul.f32 %v1380_v15, %v1370_v63  ;;  %530 = vmatpush.msrb.mxu2 %v505_v3 }
 0x3b3   :  { %1298 = vmatmul.msk.f32.vlgmr.msra.gmra.mxu2 %vm240_vm7, %v262_v16  ;;  %1383 = vrcp.f32 %v1472_v50  ;;  %v552_v16 = vld [vmem:[%s2014_s3 + $0x58] sm:$0xff]  ;;  %v543_v50 = vld [vmem:[%s2014_s3 + $0x10] sm:$0xff] }
 0x3b4   :  { %531 = vmatpush.msrb.mxu2 %v504_v4  ;;  %562 = vmatpush.msra.mxu3 %v552_v16  ;;  %v643_v16 = vld [vmem:[%s2012_s1 + $0x60] sm:$0xff] }
 0x3b6   :  { %1306 = vmatmul.msk.f32.gmra.mxu0 %vm240_vm7, %v357_v18  ;;  %v551_v18 = vld [vmem:[%s2014_s3 + $0x50] sm:$0xff] }
 0x3b7   :  { %563 = vmatpush.msra.mxu3 %v551_v18  ;;  %v641_v18 = vld [vmem:[%s2012_s1 + $0x50] sm:$0xff] }
 0x3b8   :  { %v1382_v19 = vpop.eup %1381 }
 0x3b9   :  { %v263_v20 = vmul.f32 %v1382_v19, %v1374_v6  ;;  %v1384_v51 = vpop.eup %1383 }
 0x3ba   :  { %v454_v52 = vmul.f32 32.0, %v1384_v51  ;;  %vm458_vm11 = vweird.f32 %v1384_v51 }
 0x3bb   :  { %1299 = vmatmul.msk.f32.gmra.mxu2 %vm240_vm7, %v263_v20  ;;  %v550_v20 = vld [vmem:[%s2014_s3 + $0x48] sm:$0xff] }
 0x3bc   :  { %v455_v53 = vsub.f32 1.0, %v454_v52  ;;  %564 = vmatpush.msra.mxu3 %v550_v20  ;;  %v541_v52 = vld [vmem:[%s2014_s3] sm:$0xff] }
 0x3bd   :  { %v639_v20 = vld [vmem:[%s2012_s1 + $0x40] sm:$0xff] }
 0x3be   :  { %v456_v54 = vmul.f32 %v1384_v51, %v455_v53  ;;  %565 = vmatpush.msra.mxu3 %v549_v22  ;;  %v1355_v53 = vld [vmem:[%s2013_s2 + $0x40] ss:$0 sm:$0xff] }
 0x3c0   :  { %v457_v55 = vadd.f32 %v1384_v51, %v456_v54  ;;  %566 = vmatpush.msra.mxu3 %v548_v27 }
 0x42b   :  { %v389_v30 = vpop.f32.mrf.mxu0 }
 0x42c   :  { %397 = vrot.lane.b32.xlu1 %v389_v30, %s1471_s28  ;;  %v1353_v30 = vld [vmem:[%s2014_s3 + $0x1b9] ss:$0 sm:$0xff] }
 0x433   :  { %v392_v31 = vpop.f32.mrf.mxu0 }
 0x434   :  { %399 = vrot.lane.b32.xlu0 %v392_v31, %s1471_s28  ;;  %v547_v31 = vld [vmem:[%s2014_s3 + $0x30] sm:$0xff] }
 0x435   :  { %567 = vmatpush.msra.mxu3 %v547_v31 }
 0x436   :  { %v291_v33 = vpop.f32.mrf.mxu2 }
 0x43e   :  { %v294_v36 = vpop.f32.mrf.mxu2 }
 0x49e   :  { %v398_v34 = vpop.permute.xlu1 %397 }
 0x49f   :  { %v403_v35 = vsel %vm150_vm5, %v291_v33, %v398_v34 }
 0x4a0   :  { %1307 = vmatmul.msk.f32.vlgmr.msra.gmra.mxu1 %vm414_vm9, %v403_v35  ;;  %v1354_v35 = vld [vmem:[%s2014_s3 + $0x1ba] ss:$0 sm:$0xff] }
 0x4a6   :  { %v400_v38 = vpop.permute.xlu0 %399 }
 0x4a7   :  { %v404_v39 = vsel %vm150_vm5, %v294_v36, %v400_v38  ;;  %v546_v36 = vld [vmem:[%s2014_s3 + $0x28] sm:$0xff] }
 0x4a8   :  { %1308 = vmatmul.msk.f32.gmra.mxu1 %vm414_vm9, %v404_v39  ;;  %568 = vmatpush.msra.mxu3 %v546_v36 }
 0x51d   :  { %v438_v42 = vpop.f32.mrf.mxu1 }
 0x51e   :  { %v439_v43 = vadd.f32 %v1352_v40, %v438_v42 }
 0x520   :  { %v444_v44 = vadd.f32 %v439_v43, %v1557_v24  ;;  %v1654_v24 = vsel %vm458_vm11, %v1384_v51, %v457_v55  ;;  %v542_v51 = vld [vmem:[%s2014_s3 + $0x8] sm:$0xff] }
 0x522   :  { %v446_v45 = vsel %vm150_vm5, %v444_v44, 0.0 }
 0x523   :  { %447 = vadd.xlane.f32.xlu2 %v446_v45 }
 0x525   :  { %v441_v46 = vpop.f32.mrf.mxu1 }
 0x526   :  { %v442_v47 = vadd.f32 %v1352_v40, %v441_v46  ;;  %v545_v40 = vld [vmem:[%s2014_s3 + $0x20] sm:$0xff] }
 0x527   :  { %569 = vmatpush.msra.mxu3 %v545_v40 }
 0x528   :  { %v445_v48 = vadd.f32 %v442_v47, %v1563_v26 }
 0x52a   :  { %v450_v49 = vsel %vm449_vm10, %v445_v48, 0.0 }
 0x52b   :  { %451 = vadd.xlane.f32.xlu1 %v450_v49 }
 0x596   :  { %v448_v56 = vpop.xlane.xlu2 %447 }
 0x597   :  { %v460_v57 = vmul.f32 %v1654_v24, %v448_v56 }
 0x599   :  { %v462_v58 = vsub.f32 %v444_v44, %v460_v57  ;;  %v544_v44 = vld [vmem:[%s2014_s3 + $0x18] sm:$0xff] }
 0x59a   :  { %570 = vmatpush.msra.mxu3 %v544_v44  ;;  %v1358_v44 = vld [vmem:[%s2014_s3 + $0x1bd] ss:$0 sm:$0xff] }
 0x59b   :  { %v464_v59 = vmul.f32 %v462_v58, %v462_v58 }
 0x59c   :  { %571 = vmatpush.msra.mxu3 %v543_v50 }
 0x59d   :  { %v466_v26 = vsel %vm150_vm5, %v464_v59, 0.0 }
 0x59e   :  { %467 = vadd.xlane.f32.xlu0 %v466_v26  ;;  %v452_v60 = vpop.xlane.xlu1 %451  ;;  %572 = vmatpush.msra.mxu3 %v542_v51  ;;  %v1356_v26 = vld [vmem:[%s2014_s3 + $0x1bb] ss:$0 sm:$0xff] }
 0x59f   :  { %v461_v61 = vmul.f32 %v1654_v24, %v452_v60 }
 0x5a0   :  { %573 = vmatpush.msra.mxu3 %v541_v52 }
 0x5a1   :  { %v1659_v62 = vsub.f32 %v445_v48, %v461_v61 }
 0x5a3   :  { %v465_v63 = vmul.f32 %v1659_v62, %v1659_v62 }
 0x5a5   :  { %v469_v0 = vsel %vm449_vm10, %v465_v63, 0.0 }
 0x5a6   :  { %470 = vadd.xlane.f32.xlu2 %v469_v0 }
 0x611   :  { %v468_v5 = vpop.xlane.xlu0 %467 }
 0x612   :  { %v472_v6 = vmul.f32 %v468_v5, %v1654_v24 }
 0x614   :  { %v474_v7 = vadd.f32 1e-05, %v472_v6 }
 0x616   :  { %1385 = vrsqrt.f32 %v474_v7  ;;  %vm482_vm13 = vweird.f32 %v474_v7 }
 0x619   :  { %v471_v11 = vpop.xlane.xlu2 %470 }
 0x61a   :  { %v473_v12 = vmul.f32 %v471_v11, %v1654_v24 }
 0x61c   :  { %v1386_v14 = vpop.eup %1385  ;;  %v475_v15 = vadd.f32 1e-05, %v473_v12 }
 0x61d   :  { %v477_v17 = vmul.f32 %v1386_v14, %v474_v7  ;;  %vm483_vm12 = vweird.f32 %v1386_v14 }
 0x61e   :  { %1387 = vrsqrt.f32 %v475_v15  ;;  %vm484_vm14 = vmor %vm482_vm13, %vm483_vm12  ;;  %vm492_vm0 = vweird.f32 %v475_v15 }
 0x61f   :  { %v478_v19 = vmul.f32 %v1386_v14, %v477_v17  ;;  %v644_v17 = vld [vmem:[%s2012_s1 + $0x68] sm:$0xff] }
 0x621   :  { %v479_v21 = vmul.f32 0.5, %v478_v19  ;;  %v642_v19 = vld [vmem:[%s2012_s1 + $0x58] sm:$0xff] }
 0x623   :  { %v480_v23 = vsub.f32 1.5, %v479_v21  ;;  %v640_v21 = vld [vmem:[%s2012_s1 + $0x48] sm:$0xff] }
 0x624   :  { %v1388_v25 = vpop.eup %1387 }
 0x625   :  { %v481_v28 = vmul.f32 %v1386_v14, %v480_v23  ;;  %v487_v29 = vmul.f32 %v1388_v25, %v475_v15  ;;  %vm493_vm15 = vweird.f32 %v1388_v25  ;;  %v646_v15 = vld [vmem:[%s2012_s1 + $0x78] sm:$0xff] }
 0x626   :  { %vm494_vm1 = vmor %vm492_vm0, %vm493_vm15  ;;  %688 = vmatpush.msrb.mxu1 %v646_v15 }
 0x627   :  { %v485_v32 = vsel %vm484_vm14, %v1386_v14, %v481_v28  ;;  %v488_v33 = vmul.f32 %v1388_v25, %v487_v29  ;;  %v645_v14 = vld [vmem:[%s2012_s1 + $0x70] sm:$0xff] }
 0x628   :  { %v496_v34 = vmul.f32 %v485_v32, %v462_v58  ;;  %665 = vmatpush.msrb.mxu0 %v645_v14  ;;  %689 = vmatpush.msrb.mxu1 %v644_v17 }
 0x629   :  { %v489_v38 = vmul.f32 0.5, %v488_v33 }
 0x62a   :  { %v499_v39 = vmul.f32 %v1353_v30, %v496_v34  ;;  %666 = vmatpush.msrb.mxu0 %v643_v16  ;;  %690 = vmatpush.msrb.mxu1 %v642_v19 }
 0x62b   :  { %v490_v42 = vsub.f32 1.5, %v489_v38 }
 0x62c   :  { %v502_v43 = vadd.f32 %v1354_v35, %v499_v39  ;;  %667 = vmatpush.msrb.mxu0 %v641_v18  ;;  %691 = vmatpush.msrb.mxu1 %v640_v21  ;;  %v1357_v39 = vld [vmem:[%s2014_s3 + $0x1bc] ss:$0 sm:$0xff] }
 0x62d   :  { %v491_v45 = vmul.f32 %v1388_v25, %v490_v42 }
 0x62e   :  { %1309 = vmatmul.msk.f32.vlgmr.msrb.gmra.mxu2 %vm150_vm5, %v502_v43  ;;  %668 = vmatpush.msrb.mxu0 %v639_v20 }
 0x62f   :  { %v495_v46 = vsel %vm494_vm1, %v1388_v25, %v491_v45 }
 0x630   :  { %v497_v47 = vmul.f32 %v495_v46, %v1659_v62 }
 0x632   :  { %v500_v48 = vmul.f32 %v1353_v30, %v497_v47 }
 0x634   :  { %v503_v49 = vadd.f32 %v1354_v35, %v500_v48 }
 0x636   :  { %1310 = vmatmul.msk.f32.gmra.mxu2 %vm150_vm5, %v503_v49 }
 0x6b1   :  { %v533_v54 = vpop.f32.mrf.mxu2 }
 0x6b2   :  { %v534_v55 = vadd.f32 %v1355_v53, %v533_v54 }
 0x6b4   :  { %v539_v56 = vmax.f32 %v534_v55, 0.0 }
 0x6b6   :  { %574 = vmatmul.f32.vlgmr.msra.gmra.mxu3 %v539_v56 }
 0x6b9   :  { %v536_v57 = vpop.f32.mrf.mxu2 }
 0x6ba   :  { %v537_v58 = vadd.f32 %v1355_v53, %v536_v57 }
 0x6bc   :  { %v540_v59 = vmax.f32 %v537_v58, 0.0 }
 0x6be   :  { %577 = vmatmul.f32.gmra.mxu3 %v540_v59 }
 0x739   :  { %v575_v60 = vpop.f32.mrf.mxu3 }
 0x73a   :  { %v576_v61 = vadd.f32 %v1356_v26, %v575_v60 }
 0x73c   :  { %v581_v62 = vadd.f32 %v576_v61, %v502_v43 }
 0x73e   :  { %v583_v63 = vsel %vm150_vm5, %v581_v62, 0.0 }
 0x73f   :  { %584 = vadd.xlane.f32.xlu2 %v583_v63 }
 0x741   :  { %v578_v0 = vpop.f32.mrf.mxu3 }
 0x742   :  { %v579_v1 = vadd.f32 %v1356_v26, %v578_v0 }
 0x744   :  { %v582_v2 = vadd.f32 %v579_v1, %v503_v49 }
 0x746   :  { %v586_v3 = vsel %vm449_vm10, %v582_v2, 0.0 }
 0x747   :  { %587 = vadd.xlane.f32.xlu2 %v586_v3 }
 0x7b2   :  { %v585_v4 = vpop.xlane.xlu2 %584 }
 0x7b3   :  { %v589_v5 = vmul.f32 %v585_v4, %v1654_v24 }
 0x7b5   :  { %v591_v6 = vsub.f32 %v581_v62, %v589_v5 }
 0x7b7   :  { %v593_v7 = vmul.f32 %v591_v6, %v591_v6 }
 0x7b9   :  { %v595_v8 = vsel %vm150_vm5, %v593_v7, 0.0 }
 0x7ba   :  { %596 = vadd.xlane.f32.xlu2 %v595_v8  ;;  %v588_v9 = vpop.xlane.xlu2 %587 }
 0x7bb   :  { %v590_v10 = vmul.f32 %v588_v9, %v1654_v24 }
 0x7bd   :  { %v592_v11 = vsub.f32 %v582_v2, %v590_v10 }
 0x7bf   :  { %v594_v12 = vmul.f32 %v592_v11, %v592_v11 }
 0x7c1   :  { %v598_v13 = vsel %vm449_vm10, %v594_v12, 0.0 }
 0x7c2   :  { %599 = vadd.xlane.f32.xlu2 %v598_v13 }
 0x82d   :  { %v597_v22 = vpop.xlane.xlu2 %596 }
 0x82e   :  { %v601_v23 = vmul.f32 %v597_v22, %v1654_v24 }
 0x830   :  { %v603_v25 = vadd.f32 1e-05, %v601_v23 }
 0x832   :  { %1389 = vrsqrt.f32 %v603_v25  ;;  %vm611_vm3 = vweird.f32 %v603_v25 }
 0x835   :  { %v600_v27 = vpop.xlane.xlu2 %599 }
 0x836   :  { %v602_v28 = vmul.f32 %v600_v27, %v1654_v24 }
 0x838   :  { %v1390_v29 = vpop.eup %1389  ;;  %v604_v30 = vadd.f32 1e-05, %v602_v28 }
 0x839   :  { %v606_v31 = vmul.f32 %v1390_v29, %v603_v25  ;;  %vm612_vm2 = vweird.f32 %v1390_v29 }
 0x83a   :  { %1391 = vrsqrt.f32 %v604_v30  ;;  %vm613_vm4 = vmor %vm611_vm3, %vm612_vm2  ;;  %vm621_vm12 = vweird.f32 %v604_v30 }
 0x83b   :  { %v607_v32 = vmul.f32 %v1390_v29, %v606_v31 }
 0x83d   :  { %v608_v33 = vmul.f32 0.5, %v607_v32 }
 0x83f   :  { %v609_v34 = vsub.f32 1.5, %v608_v33 }
 0x840   :  { %v1392_v35 = vpop.eup %1391 }
 0x841   :  { %v610_v36 = vmul.f32 %v1390_v29, %v609_v34  ;;  %v616_v38 = vmul.f32 %v1392_v35, %v604_v30  ;;  %vm622_vm11 = vweird.f32 %v1392_v35 }
 0x842   :  { %vm623_vm13 = vmor %vm621_vm12, %vm622_vm11 }
 0x843   :  { %v614_v40 = vsel %vm613_vm4, %v1390_v29, %v610_v36  ;;  %v617_v42 = vmul.f32 %v1392_v35, %v616_v38 }
 0x844   :  { %v625_v43 = vmul.f32 %v614_v40, %v591_v6 }
 0x845   :  { %v618_v45 = vmul.f32 0.5, %v617_v42 }
 0x846   :  { %v628_v46 = vmul.f32 %v1357_v39, %v625_v43 }
 0x847   :  { %v619_v47 = vsub.f32 1.5, %v618_v45 }
 0x848   :  { %v1779_v48 = vadd.f32 %v1358_v44, %v628_v46 }
 0x849   :  { %v620_v49 = vmul.f32 %v1392_v35, %v619_v47  ;;  %v905_v47 = vld [vmem:[%s2014_s3 + $0x178] sm:$0xff] }
 0x84a   :  { %1311 = vmatmul.msk.f32.vlgmr.msrb.gmra.mxu0 %vm150_vm5, %v1779_v48  ;;  %1313 = vmatmul.msk.f32.vlgmr.msrb.gmra.mxu1 %vm150_vm5, %v1779_v48 }
 0x84b   :  { %v624_v50 = vsel %vm623_vm13, %v1392_v35, %v620_v49  ;;  %v904_v49 = vld [vmem:[%s2014_s3 + $0x170] sm:$0xff]  ;;  %921 = vmatpush.msrb.mxu3 %v905_v47  ;;  %v1034_v47 = vld [vmem:[%s2014_s3 + $0xc8] sm:$0xff] }
 0x84c   :  { %v626_v51 = vmul.f32 %v624_v50, %v592_v11  ;;  %v903_v50 = vld [vmem:[%s2014_s3 + $0x168] sm:$0xff] }
 0x84d   :  { %922 = vmatpush.msrb.mxu3 %v904_v49  ;;  %v1033_v49 = vld [vmem:[%s2014_s3 + $0xc0] sm:$0xff] }
 0x84e   :  { %v629_v52 = vmul.f32 %v1357_v39, %v626_v51  ;;  %v902_v51 = vld [vmem:[%s2014_s3 + $0x160] sm:$0xff] }
 0x84f   :  { %923 = vmatpush.msrb.mxu3 %v903_v50 }
 0x850   :  { %v1785_v53 = vadd.f32 %v1358_v44, %v629_v52  ;;  %v901_v52 = vld [vmem:[%s2014_s3 + $0x158] sm:$0xff] }
 0x851   :  { %924 = vmatpush.msrb.mxu3 %v902_v51  ;;  %v1032_v51 = vld [vmem:[%s2014_s3 + $0xb8] sm:$0xff] }
 0x852   :  { %1312 = vmatmul.msk.f32.gmra.mxu0 %vm150_vm5, %v1785_v53  ;;  %1314 = vmatmul.msk.f32.gmra.mxu1 %vm150_vm5, %v1785_v53 }
 0x853   :  { %925 = vmatpush.msrb.mxu3 %v901_v52 }
 0x8c7   :  { %v670_v54 = vpop.f32.mrf.mxu0  ;;  %v693_v55 = vpop.f32.mrf.mxu1 }
 0x8c8   :  { %790 = vrot.lane.b32.xlu2 %v670_v54, %s1469_s26  ;;  %794 = vrot.lane.b32.xlu0 %v670_v54, %s1471_s28 }
 0x8cf   :  { %v673_v56 = vpop.f32.mrf.mxu0  ;;  %v696_v57 = vpop.f32.mrf.mxu1 }
 0x8d0   :  { %701 = vrot.lane.b32.xlu2 %v670_v54, %s1470_s27  ;;  %1319 = vmatpush.msk.msra.mxu0 %vm270_vm6, %v696_v57 }
 0x8d1   :  { %792 = vrot.lane.b32.xlu0 %v673_v56, %s1469_s26  ;;  %796 = vrot.lane.b32.xlu1 %v673_v56, %s1471_s28 }
 0x8d2   :  { %782 = vmatpush.msra.mxu0 %v693_v55 }
 0x8d9   :  { %703 = vrot.lane.b32.xlu1 %v673_v56, %s1470_s27 }
 0x922   :  { %v791_v59 = vpop.permute.xlu2 %790 }
 0x92a   :  { %v702_v61 = vpop.permute.xlu2 %701 }
 0x93a   :  { %v795_v26 = vpop.permute.xlu0 %794 }
 0x943   :  { %v797_v58 = vpop.permute.xlu1 %796  ;;  %v793_v62 = vpop.permute.xlu0 %792 }
 0x944   :  { %1322 = vmatpush.xpose.msk.msra.mxu1 %vm150_vm5, %v797_v58  ;;  %v898_v58 = vld [vmem:[%s2014_s3 + $0x140] sm:$0xff] }
 0x948   :  { %1323 = vmatpush.xpose.msk.msra.mxu1 %vm150_vm5, %v795_v26 }
 0x94b   :  { %v704_v60 = vpop.permute.xlu1 %703  ;;  %1324 = vmatmul.msk.f32.vlgmr.msra.gmra.mxu1 %vm150_vm5, %v791_v59 }
 0x94c   :  { %1315 = vmatpush.xpose.msk.msra.mxu2 %vm150_vm5, %v704_v60 }
 0x950   :  { %1316 = vmatpush.xpose.msk.msra.mxu2 %vm150_vm5, %v702_v61 }
 0x953   :  { %1317 = vmatmul.msk.f32.vlgmr.msra.gmra.mxu2 %vm150_vm5, %v670_v54  ;;  %1325 = vmatmul.msk.f32.gmra.mxu1 %vm150_vm5, %v793_v62  ;;  %v900_v54 = vld [vmem:[%s2014_s3 + $0x150] sm:$0xff] }
 0x954   :  { %926 = vmatpush.msrb.mxu3 %v900_v54  ;;  %v1031_v54 = vld [vmem:[%s2014_s3 + $0xb0] sm:$0xff] }
 0x95b   :  { %1318 = vmatmul.msk.f32.gmra.mxu2 %vm150_vm5, %v673_v56 }
 0x9c8   :  { %v823_v63 = vpop.f32.mrf.mxu1 }
 0x9c9   :  { %v824_v0 = vadd.f32 %v823_v63, %v1590_v37 }
 0x9cb   :  { %v829_v1 = vsel %vm240_vm7, %v824_v0, -inf }
 0x9cc   :  { %830 = vmax.xlane.f32.xlu0 %v829_v1 }
 0x9d0   :  { %v826_v2 = vpop.f32.mrf.mxu1 }
 0x9d1   :  { %v827_v3 = vadd.f32 %v826_v2, %v1597_v41 }
 0x9d3   :  { %v832_v4 = vsel %vm244_vm8, %v827_v3, -inf }
 0x9d4   :  { %833 = vmax.xlane.f32.xlu1 %v832_v4 }
 0x9d6   :  { %v730_v5 = vpop.f32.mrf.mxu2 }
 0x9d7   :  { %v731_v6 = vadd.f32 %v730_v5, %v1590_v37 }
 0x9d9   :  { %v736_v7 = vsel %vm240_vm7, %v731_v6, -inf }
 0x9da   :  { %737 = vmax.xlane.f32.xlu2 %v736_v7 }
 0x9de   :  { %v733_v8 = vpop.f32.mrf.mxu2 }
 0x9df   :  { %v734_v9 = vadd.f32 %v733_v8, %v1597_v41 }
 0x9e1   :  { %v739_v10 = vsel %vm244_vm8, %v734_v9, -inf }
 0x9e2   :  { %740 = vmax.xlane.f32.xlu1 %v739_v10 }
 0x9f2   :  { %854 = vrot.lane.b32.xlu2 %v696_v57, %s1469_s26 }
 0x9fb   :  { %852 = vrot.lane.b32.xlu1 %v693_v55, %s1469_s26  ;;  %v899_v55 = vld [vmem:[%s2014_s3 + $0x148] sm:$0xff] }
 0x9fc   :  { %927 = vmatpush.msrb.mxu3 %v899_v55 }
 0x9fe   :  { %928 = vmatpush.msrb.mxu3 %v898_v58  ;;  %v1029_v58 = vld [vmem:[%s2014_s3 + $0xa0] sm:$0xff] }
 0xa3f   :  { %v831_v11 = vpop.xlane.xlu0 %830 }
 0xa40   :  { %v835_v12 = vsub.f32 %v824_v0, %v831_v11  ;;  %v1359_v0 = vld [vmem:[%s2014_s3 + $0x1c0] ss:$0 sm:$0xff] }
 0xa42   :  { %v837_v13 = vmul.f32 1.442695, %v835_v12 }
 0xa44   :  { %1393 = vpow2.f32 %v837_v13 }
 0xa47   :  { %v834_v14 = vpop.xlane.xlu1 %833 }
 0xa48   :  { %v836_v15 = vsub.f32 %v827_v3, %v834_v14 }
 0xa4a   :  { %v1394_v37 = vpop.eup %1393  ;;  %v839_v16 = vmul.f32 1.442695, %v836_v15 }
 0xa4b   :  { %v841_v17 = vsel %vm240_vm7, %v1394_v37, 0.0 }
 0xa4c   :  { %1395 = vpow2.f32 %v839_v16  ;;  %842 = vadd.xlane.f32.xlu0 %v841_v17  ;;  %v991_v16 = vld [vmem:[%s2013_s2 + $0x38] sm:$0xff]  ;;  %v990_v17 = vld [vmem:[%s2013_s2 + $0x30] sm:$0xff] }
 0xa4d   :  { %v738_v41 = vpop.xlane.xlu2 %737  ;;  %1012 = vmatpush.msrb.mxu0 %v991_v16 }
 0xa4e   :  { %v742_v18 = vsub.f32 %v731_v6, %v738_v41  ;;  %v989_v41 = vld [vmem:[%s2013_s2 + $0x28] sm:$0xff] }
 0xa4f   :  { %1013 = vmatpush.msrb.mxu0 %v990_v17 }
 0xa50   :  { %v744_v19 = vmul.f32 1.442695, %v742_v18  ;;  %v988_v18 = vld [vmem:[%s2013_s2 + $0x20] sm:$0xff] }
 0xa51   :  { %1014 = vmatpush.msrb.mxu0 %v989_v41 }
 0xa52   :  { %v1396_v20 = vpop.eup %1395  ;;  %1397 = vpow2.f32 %v744_v19 }
 0xa53   :  { %v844_v21 = vsel %vm244_vm8, %v1396_v20, 0.0  ;;  %1015 = vmatpush.msrb.mxu0 %v988_v18 }
 0xa54   :  { %845 = vadd.xlane.f32.xlu0 %v844_v21 }
 0xa55   :  { %v741_v22 = vpop.xlane.xlu1 %740  ;;  %v855_v23 = vpop.permute.xlu2 %854 }
 0xa56   :  { %v743_v25 = vsub.f32 %v734_v9, %v741_v22  ;;  %1326 = vmatpush.msk.msrb.mxu2 %vm270_vm6, %v855_v23 }
 0xa58   :  { %v1398_v27 = vpop.eup %1397  ;;  %v746_v28 = vmul.f32 1.442695, %v743_v25 }
 0xa59   :  { %v748_v29 = vsel %vm240_vm7, %v1398_v27, 0.0 }
 0xa5a   :  { %1399 = vpow2.f32 %v746_v28 }
 0xa5c   :  { %749 = vadd.xlane.f32.xlu0 %v748_v29 }
 0xa60   :  { %v1400_v30 = vpop.eup %1399 }
 0xa61   :  { %v751_v31 = vsel %vm244_vm8, %v1400_v30, 0.0 }
 0xa64   :  { %752 = vadd.xlane.f32.xlu0 %v751_v31 }
 0xa6d   :  { %v853_v32 = vpop.permute.xlu1 %852 }
 0xa6e   :  { %880 = vmatpush.msrb.mxu2 %v853_v32 }
 0xabf   :  { %v843_v33 = vpop.xlane.xlu0 %842 }
 0xac0   :  { %1401 = vrcp.f32 %v843_v33  ;;  %v1361_v33 = vld [vmem:[%s2014_s3 + $0x1c2] ss:$0 sm:$0xff] }
 0xac6   :  { %v1402_v34 = vpop.eup %1401 }
 0xac7   :  { %v849_v35 = vmul.f32 %v1402_v34, %v1394_v37  ;;  %v846_v36 = vpop.xlane.xlu0 %845 }
 0xac8   :  { %1403 = vrcp.f32 %v846_v36  ;;  %v1040_v36 = vld [vmem:[%s2014_s3 + $0xf8] sm:$0xff] }
 0xac9   :  { %1327 = vmatmul.msk.f32.vlgmr.msrb.gmra.mxu2 %vm240_vm7, %v849_v35  ;;  %1042 = vmatpush.msrb.mxu1 %v1040_v36 }
 0xace   :  { %v1404_v38 = vpop.eup %1403 }
 0xacf   :  { %v750_v39 = vpop.xlane.xlu0 %749  ;;  %v850_v40 = vmul.f32 %v1404_v38, %v1396_v20  ;;  %v1039_v38 = vld [vmem:[%s2014_s3 + $0xf0] sm:$0xff] }
 0xad0   :  { %1405 = vrcp.f32 %v750_v39  ;;  %v1038_v39 = vld [vmem:[%s2014_s3 + $0xe8] sm:$0xff]  ;;  %1043 = vmatpush.msrb.mxu1 %v1039_v38 }
 0xad1   :  { %1328 = vmatmul.msk.f32.gmra.mxu2 %vm240_vm7, %v850_v40 }
 0xad2   :  { %1044 = vmatpush.msrb.mxu1 %v1038_v39 }
 0xad6   :  { %v1406_v42 = vpop.eup %1405 }
 0xad7   :  { %v756_v43 = vmul.f32 %v1406_v42, %v1398_v27  ;;  %v753_v44 = vpop.xlane.xlu0 %752 }
 0xad8   :  { %1407 = vrcp.f32 %v753_v44 }
 0xad9   :  { %1320 = vmatmul.msk.f32.vlgmr.msra.gmra.mxu0 %vm240_vm7, %v756_v43  ;;  %v1037_v43 = vld [vmem:[%s2014_s3 + $0xe0] sm:$0xff] }
 0xada   :  { %1045 = vmatpush.msrb.mxu1 %v1037_v43  ;;  %v1364_v43 = vld [vmem:[%s2014_s3 + $0x1c4] ss:$0 sm:$0xff] }
 0xade   :  { %v1408_v45 = vpop.eup %1407 }
 0xadf   :  { %v757_v46 = vmul.f32 %v1408_v45, %v1400_v30  ;;  %v1360_v30 = vld [vmem:[%s2014_s3 + $0x1c1] ss:$0 sm:$0xff]  ;;  %v1036_v45 = vld [vmem:[%s2014_s3 + $0xd8] sm:$0xff] }
 0xae0   :  { %1046 = vmatpush.msrb.mxu1 %v1036_v45 }
 0xae1   :  { %1321 = vmatmul.msk.f32.gmra.mxu0 %vm240_vm7, %v757_v46  ;;  %v1035_v46 = vld [vmem:[%s2014_s3 + $0xd0] sm:$0xff] }
 0xae2   :  { %1047 = vmatpush.msrb.mxu1 %v1035_v46  ;;  %v1365_v46 = vld [vmem:[%s2014_s3 + $0x1c5] ss:$0 sm:$0xff] }
 0xae4   :  { %1048 = vmatpush.msrb.mxu1 %v1034_v47 }
 0xae6   :  { %1049 = vmatpush.msrb.mxu1 %v1033_v49 }
 0xae8   :  { %1050 = vmatpush.msrb.mxu1 %v1032_v51 }
 0xaea   :  { %1051 = vmatpush.msrb.mxu1 %v1031_v54 }
 0xb4c   :  { %v882_v56 = vpop.f32.mrf.mxu2 }
 0xb4d   :  { %890 = vrot.lane.b32.xlu2 %v882_v56, %s1471_s28  ;;  %v1030_v56 = vld [vmem:[%s2014_s3 + $0xa8] sm:$0xff] }
 0xb4e   :  { %1052 = vmatpush.msrb.mxu1 %v1030_v56 }
 0xb50   :  { %1053 = vmatpush.msrb.mxu1 %v1029_v58 }
 0xb54   :  { %v885_v57 = vpop.f32.mrf.mxu2 }
 0xb55   :  { %892 = vrot.lane.b32.xlu0 %v885_v57, %s1471_s28 }
 0xb56   :  { %v784_v59 = vpop.f32.mrf.mxu0 }
 0xb5e   :  { %v787_v61 = vpop.f32.mrf.mxu0 }
 0xba7   :  { %v891_v26 = vpop.permute.xlu2 %890 }
 0xba8   :  { %v896_v60 = vsel %vm150_vm5, %v784_v59, %v891_v26  ;;  %v1028_v26 = vld [vmem:[%s2014_s3 + $0x98] sm:$0xff] }
 0xba9   :  { %1329 = vmatmul.msk.f32.vlgmr.msrb.gmra.mxu3 %vm414_vm9, %v896_v60  ;;  %1054 = vmatpush.msrb.mxu1 %v1028_v26 }
 0xbc7   :  { %v893_v62 = vpop.permute.xlu0 %892 }
 0xbc8   :  { %v897_v63 = vsel %vm150_vm5, %v787_v61, %v893_v62 }
 0xbc9   :  { %1330 = vmatmul.msk.f32.gmra.mxu3 %vm414_vm9, %v897_v63 }
 0xc2c   :  { %v930_v1 = vpop.f32.mrf.mxu3 }
 0xc2d   :  { %v931_v2 = vadd.f32 %v1359_v0, %v930_v1  ;;  %v1027_v1 = vld [vmem:[%s2014_s3 + $0x90] sm:$0xff] }
 0xc2e   :  { %1055 = vmatpush.msrb.mxu1 %v1027_v1 }
 0xc2f   :  { %v936_v3 = vadd.f32 %v931_v2, %v1779_v48  ;;  %v1026_v2 = vld [vmem:[%s2014_s3 + $0x88] sm:$0xff] }
 0xc30   :  { %1056 = vmatpush.msrb.mxu1 %v1026_v2 }
 0xc31   :  { %v938_v4 = vsel %vm150_vm5, %v936_v3, 0.0 }
 0xc32   :  { %939 = vadd.xlane.f32.xlu1 %v938_v4  ;;  %v1362_v4 = vld [vmem:[%s2013_s2 + $0x41] ss:$0 sm:$0xff]  ;;  %s1267_s2 = sshll.u32 %s2016_s5, 4  ;;  %s1268_s2 = int_to_ptr.hbm [resolvable:$true] %s1267_s2 }
 0xc4c   :  { %v933_v5 = vpop.f32.mrf.mxu3 }
 0xc4d   :  { %v934_v6 = vadd.f32 %v1359_v0, %v933_v5 }
 0xc4f   :  { %v937_v7 = vadd.f32 %v934_v6, %v1785_v53 }
 0xc51   :  { %v941_v8 = vsel %vm449_vm10, %v937_v7, 0.0 }
 0xc52   :  { %942 = vadd.xlane.f32.xlu2 %v941_v8 }
 0xca5   :  { %v940_v9 = vpop.xlane.xlu1 %939 }
 0xca6   :  { %v944_v10 = vmul.f32 %v940_v9, %v1654_v24 }
 0xca8   :  { %v946_v11 = vsub.f32 %v936_v3, %v944_v10  ;;  %v1025_v3 = vld [vmem:[%s2014_s3 + $0x80] sm:$0xff] }
 0xca9   :  { %1057 = vmatpush.msrb.mxu1 %v1025_v3 }
 0xcaa   :  { %v948_v12 = vmul.f32 %v946_v11, %v946_v11 }
 0xcac   :  { %v950_v13 = vsel %vm150_vm5, %v948_v12, 0.0 }
 0xcad   :  { %951 = vadd.xlane.f32.xlu0 %v950_v13 }
 0xcc5   :  { %v943_v14 = vpop.xlane.xlu2 %942 }
 0xcc6   :  { %v945_v48 = vmul.f32 %v943_v14, %v1654_v24 }
 0xcc8   :  { %v1865_v15 = vsub.f32 %v937_v7, %v945_v48 }
 0xcca   :  { %v949_v37 = vmul.f32 %v1865_v15, %v1865_v15 }
 0xccc   :  { %v953_v53 = vsel %vm449_vm10, %v949_v37, 0.0 }
 0xccd   :  { %954 = vadd.xlane.f32.xlu1 %v953_v53 }
 0xd20   :  { %v952_v19 = vpop.xlane.xlu0 %951 }
 0xd21   :  { %v956_v20 = vmul.f32 %v952_v19, %v1654_v24 }
 0xd23   :  { %v958_v21 = vadd.f32 1e-05, %v956_v20 }
 0xd25   :  { %1409 = vrsqrt.f32 %v958_v21  ;;  %vm966_vm9 = vweird.f32 %v958_v21 }
 0xd2b   :  { %v1410_v22 = vpop.eup %1409 }
 0xd2c   :  { %v961_v23 = vmul.f32 %v1410_v22, %v958_v21  ;;  %vm967_vm8 = vweird.f32 %v1410_v22 }
 0xd2d   :  { %vm968_vm14 = vmor %vm966_vm9, %vm967_vm8 }
 0xd2e   :  { %v962_v25 = vmul.f32 %v1410_v22, %v961_v23 }
 0xd30   :  { %v963_v27 = vmul.f32 0.5, %v962_v25 }
 0xd32   :  { %v964_v28 = vsub.f32 1.5, %v963_v27 }
 0xd34   :  { %v965_v29 = vmul.f32 %v1410_v22, %v964_v28  ;;  %v1120_v28 = vld [vmem:[%s2014_s3 + $0x198] sm:$0xff] }
 0xd35   :  { %1141 = vmatpush.msra.mxu2 %v1120_v28 }
 0xd36   :  { %v969_v31 = vsel %vm968_vm14, %v1410_v22, %v965_v29  ;;  %v1119_v29 = vld [vmem:[%s2014_s3 + $0x190] sm:$0xff] }
 0xd37   :  { %v980_v32 = vmul.f32 %v969_v31, %v946_v11  ;;  %v1363_v11 = vld [vmem:[%s2014_s3 + $0x1c3] ss:$0 sm:$0xff]  ;;  %1142 = vmatpush.msra.mxu2 %v1119_v29 }
 0xd38   :  { %v1117_v31 = vld [vmem:[%s2014_s3 + $0x180] sm:$0xff] }
 0xd39   :  { %v983_v34 = vmul.f32 %v1360_v30, %v980_v32 }
 0xd3b   :  { %v1889_v35 = vadd.f32 %v1361_v33, %v983_v34 }
 0xd3d   :  { %1331 = vmatmul.msk.f32.vlgmr.msrb.gmra.mxu0 %vm150_vm5, %v1889_v35 }
 0xd40   :  { %v955_v40 = vpop.xlane.xlu1 %954 }
 0xd41   :  { %v957_v42 = vmul.f32 %v955_v40, %v1654_v24 }
 0xd43   :  { %v959_v44 = vadd.f32 1e-05, %v957_v42 }
 0xd45   :  { %1411 = vrsqrt.f32 %v959_v44  ;;  %vm976_vm0 = vweird.f32 %v959_v44 }
 0xd4b   :  { %v1412_v50 = vpop.eup %1411 }
 0xd4c   :  { %v971_v52 = vmul.f32 %v1412_v50, %v959_v44  ;;  %vm977_vm15 = vweird.f32 %v1412_v50 }
 0xd4d   :  { %vm978_vm1 = vmor %vm976_vm0, %vm977_vm15 }
 0xd4e   :  { %v972_v55 = vmul.f32 %v1412_v50, %v971_v52 }
 0xd50   :  { %v973_v57 = vmul.f32 0.5, %v972_v55 }
 0xd52   :  { %v974_v59 = vsub.f32 1.5, %v973_v57 }
 0xd54   :  { %v975_v60 = vmul.f32 %v1412_v50, %v974_v59 }
 0xd56   :  { %v979_v61 = vsel %vm978_vm1, %v1412_v50, %v975_v60 }
 0xd57   :  { %v981_v62 = vmul.f32 %v979_v61, %v1865_v15 }
 0xd59   :  { %v984_v63 = vmul.f32 %v1360_v30, %v981_v62  ;;  %v1118_v30 = vld [vmem:[%s2014_s3 + $0x188] sm:$0xff] }
 0xd5a   :  { %1143 = vmatpush.msra.mxu2 %v1118_v30 }
 0xd5b   :  { %v987_v0 = vadd.f32 %v1361_v33, %v984_v63  ;;  %v1473_v63 = vmov 41  }
 0xd5c   :  { %1144 = vmatpush.msra.mxu2 %v1117_v31  ;;  %1350 = vset.pattern.permute.xlu0 %v1473_v63 }
 0xd5d   :  { %1332 = vmatmul.msk.f32.gmra.mxu0 %vm150_vm5, %v987_v0  ;;  %1349 = vset.pattern.permute.xlu2 %v1473_v63 }
 0xdba   :  { %v1017_v5 = vpop.f32.mrf.mxu0 }
 0xdbb   :  { %v1018_v6 = vadd.f32 %v1362_v4, %v1017_v5  ;;  %v28_v5 = vld [vmem:[%s2014_s3 + $0x200] sm:$0x3f] }
 0xdbd   :  { %v1023_v7 = vmax.f32 %v1018_v6, 0.0  ;;  %v27_v6 = vld [vmem:[%s2014_s3 + $0x1f8] sm:$0xff] }
 0xdbf   :  { %1058 = vmatmul.f32.vlgmr.msrb.gmra.mxu1 %v1023_v7 }
 0xdda   :  { %v1020_v8 = vpop.f32.mrf.mxu0 }
 0xddb   :  { %v1021_v9 = vadd.f32 %v1362_v4, %v1020_v8  ;;  %v30_v4 = vld [vmem:[%s2014_s3 + $0x20a] sm:$0x3] }
 0xddd   :  { %v1024_v10 = vmax.f32 %v1021_v9, 0.0 }
 0xddf   :  { %1061 = vmatmul.f32.gmra.mxu1 %v1024_v10 }
 0xe3c   :  { %v1059_v12 = vpop.f32.mrf.mxu1 }
 0xe3d   :  { %v1060_v13 = vadd.f32 %v1363_v11, %v1059_v12 }
 0xe3f   :  { %v1065_v14 = vadd.f32 %v1060_v13, %v1889_v35  ;;  %v29_v13 = vld [vmem:[%s2014_s3 + $0x208] sm:$0x3] }
 0xe41   :  { %v1067_v48 = vsel %vm150_vm5, %v1065_v14, 0.0 }
 0xe42   :  { %1068 = vadd.xlane.f32.xlu2 %v1067_v48 }
 0xe5c   :  { %v1062_v15 = vpop.f32.mrf.mxu1 }
 0xe5d   :  { %v1063_v37 = vadd.f32 %v1363_v11, %v1062_v15  ;;  %v31_v11 = vld [vmem:[%s2014_s3 + $0x20c] sm:$0x3] }
 0xe5f   :  { %v1066_v53 = vadd.f32 %v1063_v37, %v987_v0 }
 0xe61   :  { %v1070_v16 = vsel %vm449_vm10, %v1066_v53, 0.0 }
 0xe62   :  { %1071 = vadd.xlane.f32.xlu1 %v1070_v16 }
 0xeb5   :  { %v1069_v17 = vpop.xlane.xlu2 %1068 }
 0xeb6   :  { %v1073_v41 = vmul.f32 %v1069_v17, %v1654_v24 }
 0xeb8   :  { %v1075_v18 = vsub.f32 %v1065_v14, %v1073_v41 }
 0xeba   :  { %v1077_v19 = vmul.f32 %v1075_v18, %v1075_v18 }
 0xebc   :  { %v1079_v20 = vsel %vm150_vm5, %v1077_v19, 0.0 }
 0xebd   :  { %1080 = vadd.xlane.f32.xlu2 %v1079_v20 }
 0xed5   :  { %v1072_v21 = vpop.xlane.xlu1 %1071 }
 0xed6   :  { %v1074_v22 = vmul.f32 %v1072_v21, %v1654_v24 }
 0xed8   :  { %v1076_v23 = vsub.f32 %v1066_v53, %v1074_v22 }
 0xeda   :  { %v1078_v25 = vmul.f32 %v1076_v23, %v1076_v23 }
 0xedc   :  { %v1082_v27 = vsel %vm449_vm10, %v1078_v25, 0.0 }
 0xedd   :  { %1083 = vadd.xlane.f32.xlu1 %v1082_v27 }
 0xf30   :  { %v1081_v32 = vpop.xlane.xlu2 %1080 }
 0xf31   :  { %v1085_v33 = vmul.f32 %v1081_v32, %v1654_v24 }
 0xf33   :  { %v1087_v34 = vadd.f32 1e-05, %v1085_v33 }
 0xf35   :  { %1413 = vrsqrt.f32 %v1087_v34  ;;  %vm1095_vm2 = vweird.f32 %v1087_v34 }
 0xf3b   :  { %v1414_v35 = vpop.eup %1413 }
 0xf3c   :  { %v1090_v36 = vmul.f32 %v1414_v35, %v1087_v34  ;;  %vm1096_vm10 = vweird.f32 %v1414_v35 }
 0xf3d   :  { %vm1097_vm3 = vmor %vm1095_vm2, %vm1096_vm10 }
 0xf3e   :  { %v1091_v38 = vmul.f32 %v1414_v35, %v1090_v36 }
 0xf40   :  { %v1092_v39 = vmul.f32 0.5, %v1091_v38 }
 0xf42   :  { %v1093_v40 = vsub.f32 1.5, %v1092_v39 }
 0xf44   :  { %v1094_v42 = vmul.f32 %v1414_v35, %v1093_v40 }
 0xf46   :  { %v1098_v44 = vsel %vm1097_vm3, %v1414_v35, %v1094_v42 }
 0xf47   :  { %v1109_v45 = vmul.f32 %v1098_v44, %v1075_v18 }
 0xf49   :  { %v1112_v47 = vmul.f32 %v1364_v43, %v1109_v45 }
 0xf4b   :  { %v1115_v49 = vadd.f32 %v1365_v46, %v1112_v47 }
 0xf4d   :  { %1333 = vmatmul.msk.f32.vlgmr.msra.gmra.mxu2 %vm150_vm5, %v1115_v49 }
 0xf50   :  { %v1084_v50 = vpop.xlane.xlu1 %1083 }
 0xf51   :  { %v1086_v51 = vmul.f32 %v1084_v50, %v1654_v24  ;;  %v1366_v24 = vld [vmem:[%s2014_s3 + $0x1a0] ss:$0 sm:$0xff] }
 0xf53   :  { %v1088_v52 = vadd.f32 1e-05, %v1086_v51 }
 0xf55   :  { %1415 = vrsqrt.f32 %v1088_v52  ;;  %vm1105_vm11 = vweird.f32 %v1088_v52 }
 0xf5b   :  { %v1416_v54 = vpop.eup %1415 }
 0xf5c   :  { %v1100_v55 = vmul.f32 %v1416_v54, %v1088_v52  ;;  %vm1106_vm4 = vweird.f32 %v1416_v54 }
 0xf5d   :  { %vm1107_vm12 = vmor %vm1105_vm11, %vm1106_vm4 }
 0xf5e   :  { %v1101_v56 = vmul.f32 %v1416_v54, %v1100_v55 }
 0xf60   :  { %v1102_v57 = vmul.f32 0.5, %v1101_v56 }
 0xf62   :  { %v1103_v58 = vsub.f32 1.5, %v1102_v57 }
 0xf64   :  { %v1104_v59 = vmul.f32 %v1416_v54, %v1103_v58 }
 0xf66   :  { %v1108_v26 = vsel %vm1107_vm12, %v1416_v54, %v1104_v59 }
 0xf67   :  { %v1110_v60 = vmul.f32 %v1108_v26, %v1076_v23 }
 0xf69   :  { %v1113_v61 = vmul.f32 %v1364_v43, %v1110_v60 }
 0xf6b   :  { %v1116_v62 = vadd.f32 %v1365_v46, %v1113_v61 }
 0xf6d   :  { %1334 = vmatmul.msk.f32.gmra.mxu2 %vm150_vm5, %v1116_v62  ;;  %vm1178_vm5 = vcmask 254976  }
 0xfd0   :  { %v1146_v0 = vpop.f32.mrf.mxu2 }
 0xfd1   :  { %v1147_v1 = vadd.f32 %v1366_v24, %v1146_v0 }
 0xfd3   :  { %1182 = vperm.xlu0 %1350, %v1147_v1  }
 0xff0   :  { %v1149_v2 = vpop.f32.mrf.mxu2 }
 0xff1   :  { %v1150_v3 = vadd.f32 %v1366_v24, %v1149_v2 }
 0xff3   :  { %1219 = vrot.lane.b32.xlu1 %v1150_v3, %s1469_s26  ;;  %1186 = vperm.xlu2 %1349, %v1150_v3  }
 0xff4   :  { %1335 = vmatpush.msk.msra.mxu3 %vm270_vm6, %v1150_v3 }
 0xff6   :  { %1173 = vmatpush.msra.mxu3 %v1147_v1 }
 0xff7   :  { %1336 = vmatmul.msk.f32.vlgmr.msra.gmra.mxu3 %vm240_vm7, %v30_v4 }
 0xffb   :  { %1217 = vrot.lane.b32.xlu2 %v1147_v1, %s1469_s26 }
0x1045   :  { %v1183_v7 = vpop.permute.xlu0 %1182 }
0x1046   :  { %v1189_v10 = vmul.f32 %v1183_v7, %v27_v6 }
0x104d   :  { %v1187_v8 = vpop.permute.xlu2 %1186 }
0x104e   :  { %v1190_v9 = vmul.f32 %v1187_v8, %v28_v5 }
0x1050   :  { %1337 = vmatpush.msk.msrb.mxu3 %vm270_vm6, %v1190_v9 }
0x1052   :  { %1212 = vmatpush.msrb.mxu3 %v1189_v10 }
0x1053   :  { %1338 = vmatmul.msk.f32.vlgmr.msrb.gmra.mxu3 %vm240_vm7, %v31_v11 }
0x1055   :  { %v1218_v14 = vpop.permute.xlu2 %1217 }
0x1065   :  { %v1220_v12 = vpop.permute.xlu1 %1219 }
0x1066   :  { %1339 = vmatpush.msk.msra.mxu0 %vm270_vm6, %v1220_v12  ;;  %vm1247_vm6 = vcmask 66560  }
0x1068   :  { %1242 = vmatpush.msra.mxu0 %v1218_v14 }
0x1069   :  { %1340 = vmatmul.msk.f32.vlgmr.msra.gmra.mxu0 %vm240_vm7, %v29_v13 }
0x107a   :  { %v1175_v48 = vpop.f32.mrf.mxu3 }
0x107b   :  { %1179 = vst.msk [vmem:[#allocation4] sm:$0x3] %vm1178_vm5, %v1175_v48 }
0x107c   :  { %1270 = dma.vmem_to_hbm [thread:$0]  %s1266_s10, 32, %s1268_s2, [#allocation5]  }
0x10d6   :  { %v1214_v15 = vpop.f32.mrf.mxu3 }
0x10e6   :  { %v1244_v37 = vpop.f32.mrf.mxu0 }
0x10e7   :  { %v1245_v53 = vadd.f32 %v1244_v37, %v1214_v15 }
0x10e9   :  { %1248 = vst.msk [vmem:[#allocation2] sm:$0x3] %vm1247_vm6, %v1245_v53 }
0x10ea   :  { %1259 = dma.vmem_to_hbm [thread:$0]  %s1255_s14, 32, %s1257_s16, [#allocation3]  }
0x10eb   :  { %1465 = dma.done.wait [#allocation3], 32  }
0x10ec   :  { %1466 = vsyncadd [#allocation3], 4294967264 }
0x10ed   :  { %1467 = dma.done.wait [#allocation5], 32  }
0x10ee   :  { %1468 = vsyncadd [#allocation5], 4294967264 }
0x10ef   :  { %1279 = vsyncpa [#allocation3], 1 }
0x10f0   :  { %1280 = vsyncpa [#allocation5], 1 }

</bundles_post_ra>
